<compile_context>
chip_gen: v5e
topology: v5e:2x2
jax: 0.10.0
libtpu: 0.0.40
codegen_flags: <defaults>
</compile_context>

<pallas_src>
import math
from functools import partial

import jax
import jax.numpy as jnp
import numpy as np
from jax.experimental import pallas as pl
from jax.experimental.pallas import tpu as pltpu


# ----------------------------------------------------------------------------
# in-kernel helpers
# ----------------------------------------------------------------------------
def _layer_norm(x, gamma, beta, eps=1e-5):
    # matches torch.nn.LayerNorm (biased variance, eps=1e-5); centered value reused
    mean = jnp.mean(x, axis=-1, keepdims=True)
    xc = x - mean
    var = jnp.mean(xc * xc, axis=-1, keepdims=True)
    return xc * jax.lax.rsqrt(var + eps) * gamma + beta


# ----------------------------------------------------------------------------
# fused forward kernel: layer index = grid axis 0
# ----------------------------------------------------------------------------
def fused_forward_kernel(*refs, cfg):
    n_var = cfg["n_var"]
    D = cfg["hidden"]
    B = cfg["batch"]
    var_counts = cfg["var_counts"]

    it = iter(refs)
    # resident operands (constant across the layer grid)
    fixed_in = next(it)
    var_ins = [next(it) for _ in range(n_var)]
    mask_ref = next(it)                       # (H, D) 0/1 head mask
    fixed_w = next(it)
    fixed_b = next(it)
    var_ws = [next(it) for _ in range(n_var)]
    var_bs = [next(it) for _ in range(n_var)]
    # per-layer operands (leading layer axis squeezed by BlockSpec)
    (wq_ref, bq_ref, wkv_ref, bkv_ref, attn_g_ref, attn_b_ref,
     w1_ref, b1_ref, w2_ref, b2_ref, lng_ref, lnb_ref,
     fcw_ref, fcb_ref, llng_ref, llnb_ref) = [next(it) for _ in range(16)]
    # output + scratch
    out_ref = next(it)
    q_ref = next(it)                          # (B, D) f32 query carrier
    state_refs = [next(it) for _ in range(n_var)]   # (B*L_i, D) bf16

    def mm(x, w):
        # bf16 MXU feed, f32 accumulation
        return jnp.dot(x.astype(jnp.bfloat16), w.astype(jnp.bfloat16),
                       preferred_element_type=jnp.float32)

    layer = pl.program_id(0)

    # ---- InputBuilder: run once, results persist in scratch across the grid ----
    @pl.when(layer == 0)
    def _build_inputs():
        q_ref[...] = mm(fixed_in[...], fixed_w[...]) + fixed_b[...]
        for i in range(n_var):
            st = mm(var_ins[i][...], var_ws[i][...]) + var_bs[i][...]
            state_refs[i][...] = st.astype(jnp.bfloat16)

    # ---- one attention layer per grid step ----
    mask_hd = mask_ref[...]                    # (H, D), read once per layer
    query = q_ref[...]                         # (B, D) f32
    residual = query

    # all n_var Q projections fused into one lane-dense matmul.
    # 1/sqrt(dph) is already folded into wq/bq by the wrapper.
    qp_all = mm(query, wq_ref[...]) + bq_ref[...]      # (B, n_var*D)

    y = fcb_ref[...]                                   # (1, D): accumulates sum_i x_i @ fc_w_i
    for i in range(n_var):
        Lc = var_counts[i]
        s_flat = state_refs[i][...]                    # (B*L, D) bf16

        # fused K|V projection; single (B*L, 2D) -> (B, L, 2D) reshape per branch
        kvp = mm(s_flat, wkv_ref[i]) + bkv_ref[i]      # (B*L, 2D) f32
        kv3 = kvp.reshape(B, Lc, 2 * D).astype(jnp.bfloat16)
        kp = kv3[:, :, :D]                             # (B, L, D)
        vp = kv3[:, :, D:]                             # (B, L, D)

        qp = qp_all[:, i * D:(i + 1) * D]              # (B, D), pre-scaled
        qm = (qp[:, None, :] * mask_hd).astype(jnp.bfloat16)            # (B, H, D)
        s = jnp.einsum("bhd,bld->bhl", qm, kp,
                       preferred_element_type=jnp.float32)              # (B, H, L)

        # exact softmax (no approximate reciprocal)
        m = jnp.max(s, axis=-1, keepdims=True)
        e = jnp.exp(s - m)
        p = e / jnp.sum(e, axis=-1, keepdims=True)

        o_all = jnp.einsum("bhl,bld->bhd", p.astype(jnp.bfloat16), vp,
                           preferred_element_type=jnp.float32)          # (B, H, D)
        attn = jnp.sum(o_all * mask_hd, axis=1)                         # (B, D)

        h = _layer_norm(attn + query, attn_g_ref[i], attn_b_ref[i])

        # FFN + residual LN
        x = jnp.maximum(mm(h, w1_ref[i]) + b1_ref[i], 0.0)
        x = mm(x, w2_ref[i]) + b2_ref[i]
        x = _layer_norm(x + h, lng_ref[i], lnb_ref[i])

        # concat(x_i) @ fc  ==  sum_i x_i @ fc_w_i  (no lane concat materialized)
        y = y + mm(x, fcw_ref[i])

    new_q = _layer_norm(y + residual, llng_ref[...], llnb_ref[...])
    q_ref[...] = new_q
    out_ref[...] = new_q


# ----------------------------------------------------------------------------
# InputBuilder bookkeeping + deterministic parameter init (torch.nn.Linear-like)
# ----------------------------------------------------------------------------
def build_scheme(input_scheme):
    split, fixed_idx, var_info, len_fixed = [], [], {}, 0
    for part in input_scheme["observation_pattern"]:
        if isinstance(part, int):
            fixed_idx.append(len(split))
            len_fixed += part
            split.append(part)
        else:
            l, name = part
            n = input_scheme["objects"][name]
            if name not in var_info:
                var_info[name] = {"pos": [], "len": 0, "n": n}
            var_info[name]["pos"].append((len(split), l))
            var_info[name]["len"] += l
            split.append(l * n)
    return split, fixed_idx, var_info, len_fixed


def init_linear(key, fan_in, fan_out):
    kw, kb = jax.random.split(key)
    bound = 1.0 / math.sqrt(fan_in)
    w = jax.random.uniform(kw, (fan_in, fan_out), jnp.float32, -bound, bound)
    b = jax.random.uniform(kb, (fan_out,), jnp.float32, -bound, bound)
    return w, b


def init_params(key, var_info, len_fixed, hidden_dim, n_layers):
    n_var = len(var_info)
    keys = iter(jax.random.split(key, 1 + n_var + n_layers * (5 * n_var + 1)))
    ones = jnp.ones((hidden_dim,), jnp.float32)
    zeros = jnp.zeros((hidden_dim,), jnp.float32)

    params = {"fixed_fc": init_linear(next(keys), len_fixed, hidden_dim),
              "var_fcs": {name: init_linear(next(keys), info["len"], hidden_dim)
                          for name, info in var_info.items()},
              "layers": []}
    for _ in range(n_layers):
        branches = []
        for _ in range(n_var):
            wq, bq = init_linear(next(keys), hidden_dim, hidden_dim)
            wk, bk = init_linear(next(keys), hidden_dim, hidden_dim)
            wv, bv = init_linear(next(keys), hidden_dim, hidden_dim)
            w1, b1 = init_linear(next(keys), hidden_dim, hidden_dim)
            w2, b2 = init_linear(next(keys), hidden_dim, hidden_dim)
            branches.append(dict(
                wq=wq, bq=bq, wk=wk, bk=bk, wv=wv, bv=bv,
                attn_ln_g=ones, attn_ln_b=zeros,
                w1=w1, b1=b1, w2=w2, b2=b2,
                ln_g=ones, ln_b=zeros))
        fc_w, fc_b = init_linear(next(keys), hidden_dim * n_var, hidden_dim)
        params["layers"].append(dict(branches=branches, fc_w=fc_w, fc_b=fc_b,
                                     ln_g=ones, ln_b=zeros))
    return params


# ----------------------------------------------------------------------------
# Forward pass: JAX does only the observation-splitting layout glue + weight
# stacking; the fused Pallas kernel does all compute.
# ----------------------------------------------------------------------------
def multi_attention_forward(params, inputs, *, split, fixed_idx, var_info,
                            hidden_dim, n_layers, n_heads):
    assert hidden_dim % n_heads == 0, "hidden_dim must be divisible by n_heads"
    D = hidden_dim
    dph = D // n_heads
    scale = 1.0 / math.sqrt(dph)
    bf16 = jnp.bfloat16

    offs = np.cumsum([0] + list(split))
    split_inputs = [inputs[:, offs[i]:offs[i + 1]] for i in range(len(split))]
    batch = inputs.shape[0]
    var_names = sorted(var_info.keys())
    n_var = len(var_names)

    # --- observation layout glue (pure reshapes/concats of the raw obs, done once) ---
    fixed_input = jnp.concatenate([split_inputs[i] for i in fixed_idx], axis=-1).astype(bf16)
    var_inputs_flat, var_counts = [], []
    for name in var_names:
        info = var_info[name]
        n = info["n"]
        parts = [split_inputs[idx].reshape(batch, n, l) for idx, l in info["pos"]]
        vin = jnp.concatenate(parts, axis=-1).reshape(batch * n, info["len"]).astype(bf16)
        var_inputs_flat.append(vin)
        var_counts.append(n)

    # --- stack per-layer / per-branch weights (weight matrices in bf16) ---
    layers = params["layers"]

    def br(l, i):
        return layers[l]["branches"][i]

    # fused + pre-scaled Q projection: (n_layers, D, n_var*D)
    wq_all = (jnp.stack([jnp.concatenate([br(l, i)["wq"] for i in range(n_var)], axis=-1)
                         for l in range(n_layers)]) * scale).astype(bf16)
    bq_all = jnp.stack([jnp.concatenate([br(l, i)["bq"] for i in range(n_var)], axis=-1)[None, :]
                        for l in range(n_layers)]) * scale              # (n_layers, 1, n_var*D) f32

    # fused K|V projection: (n_layers, n_var, D, 2D)
    wkv = jnp.stack([jnp.stack([jnp.concatenate([br(l, i)["wk"], br(l, i)["wv"]], axis=-1)
                                for i in range(n_var)])
                     for l in range(n_layers)]).astype(bf16)
    bkv = jnp.stack([jnp.stack([jnp.concatenate([br(l, i)["bk"], br(l, i)["bv"]], axis=-1)[None, :]
                                for i in range(n_var)])
                     for l in range(n_layers)])                          # (n_layers, n_var, 1, 2D) f32

    def stack_w(name):
        return jnp.stack([jnp.stack([br(l, i)[name] for i in range(n_var)])
                          for l in range(n_layers)]).astype(bf16)

    def stack_b(name):
        return jnp.stack([jnp.stack([br(l, i)[name][None, :] for i in range(n_var)])
                          for l in range(n_layers)])

    w1 = stack_w("w1"); b1 = stack_b("b1")
    w2 = stack_w("w2"); b2 = stack_b("b2")
    attn_g = stack_b("attn_ln_g"); attn_b = stack_b("attn_ln_b")
    ln_g = stack_b("ln_g"); ln_b = stack_b("ln_b")

    fc_w = jnp.stack([layers[l]["fc_w"].reshape(n_var, D, D)
                      for l in range(n_layers)]).astype(bf16)            # (n_layers, n_var, D, D)
    fc_b = jnp.stack([layers[l]["fc_b"][None, :] for l in range(n_layers)])
    lln_g = jnp.stack([layers[l]["ln_g"][None, :] for l in range(n_layers)])
    lln_b = jnp.stack([layers[l]["ln_b"][None, :] for l in range(n_layers)])

    head_mask = (jnp.arange(D)[None, :] // dph
                 == jnp.arange(n_heads)[:, None]).astype(jnp.float32)    # (H, D)

    fw = params["fixed_fc"][0].astype(bf16)
    fb = params["fixed_fc"][1][None, :]
    var_w_list = [params["var_fcs"][name][0].astype(bf16) for name in var_names]
    var_b_list = [params["var_fcs"][name][1][None, :] for name in var_names]

    resident_ops = ([fixed_input] + var_inputs_flat + [head_mask, fw, fb]
                    + var_w_list + var_b_list)
    per_layer_ops = [wq_all, bq_all, wkv, bkv, attn_g, attn_b,
                     w1, b1, w2, b2, ln_g, ln_b, fc_w, fc_b, lln_g, lln_b]
    operands = resident_ops + per_layer_ops

    # --- BlockSpecs: resident operands use a constant index map; per-layer stacks are
    #     indexed by the layer grid axis (leading dim squeezed) -> double-buffered DMA. ---
    def resident_spec(x):
        zeros = (0,) * x.ndim
        return pl.BlockSpec(x.shape, lambda l, _z=zeros: _z)

    def per_layer_spec(x):
        zeros = (0,) * (x.ndim - 1)
        return pl.BlockSpec((None,) + tuple(x.shape[1:]),
                            lambda l, _z=zeros: (l,) + _z)

    in_specs = ([resident_spec(x) for x in resident_ops]
                + [per_layer_spec(x) for x in per_layer_ops])

    cfg = dict(n_var=n_var, n_heads=n_heads, hidden=D, batch=batch,
               var_counts=tuple(var_counts))

    # --- cost estimate (advisory) ---
    flops = 2 * batch * fixed_input.shape[1] * D
    flops += sum(2 * v.shape[0] * v.shape[1] * D for v in var_inputs_flat)
    fl = 2 * batch * D * (n_var * D)
    for n in var_counts:
        fl += (2 * batch * n * D * 2 * D            # K|V projection
               + 2 * batch * n_heads * n * D        # QK^T
               + 2 * batch * n_heads * n * D        # PV
               + 2 * 2 * batch * D * D              # FFN
               + 2 * batch * D * D)                 # combine fc
    flops += n_layers * fl
    transcendentals = n_layers * sum(batch * n_heads * n for n in var_counts)
    bytes_accessed = int(sum(int(x.size) * x.dtype.itemsize for x in operands)
                         + batch * D * 4)

    grid_spec = pltpu.PrefetchScalarGridSpec(
        num_scalar_prefetch=0,
        grid=(n_layers,),
        in_specs=in_specs,
        out_specs=pl.BlockSpec((batch, D), lambda l: (0, 0)),
        scratch_shapes=[pltpu.VMEM((batch, D), jnp.float32)]               # query carrier
                      + [pltpu.VMEM((batch * n, D), jnp.bfloat16)           # per-object states
                         for n in var_counts],
    )

    return pl.pallas_call(
        partial(fused_forward_kernel, cfg=cfg),
        out_shape=jax.ShapeDtypeStruct((batch, D), jnp.float32),
        grid_spec=grid_spec,
        compiler_params=pltpu.CompilerParams(
            dimension_semantics=("arbitrary",),        # layer-carried dependency
            vmem_limit_bytes=32 * 1024 * 1024),
        cost_estimate=pl.CostEstimate(flops=int(flops),
                                      transcendentals=int(transcendentals),
                                      bytes_accessed=bytes_accessed),
    )(*operands)


# ----------------------------------------------------------------------------
# Pure-JAX reference (mirrors the PyTorch forward).
#   bf16_matmul_inputs=False : full f32, explicit HIGHEST matmul precision.
#   bf16_matmul_inputs=True  : same graph with bf16 rounding at every matmul input
#                              (f32 accumulation) -- precision-matched to the kernel.
# ----------------------------------------------------------------------------
def reference_forward(params, inputs, *, split, fixed_idx, var_info,
                      hidden_dim, n_layers, n_heads, bf16_matmul_inputs=False):
    if bf16_matmul_inputs:
        cast = lambda x: x.astype(jnp.bfloat16)
        mm_kw = dict(preferred_element_type=jnp.float32)
    else:
        cast = lambda x: x
        mm_kw = dict(precision=jax.lax.Precision.HIGHEST)

    def dot(x, w):
        return jnp.dot(cast(x), cast(w), **mm_kw)

    def ein(expr, a, b):
        return jnp.einsum(expr, cast(a), cast(b), **mm_kw)

    def ln(x, g, b, eps=1e-5):
        m = jnp.mean(x, -1, keepdims=True)
        v = jnp.mean((x - m) ** 2, -1, keepdims=True)
        return (x - m) / jnp.sqrt(v + eps) * g + b

    offs = np.cumsum([0] + list(split))
    split_inputs = [inputs[:, offs[i]:offs[i + 1]] for i in range(len(split))]
    batch = inputs.shape[0]
    dph = hidden_dim // n_heads

    fw, fb = params["fixed_fc"]
    query = dot(jnp.concatenate([split_inputs[i] for i in fixed_idx], axis=-1), fw) + fb

    var_states = {}
    for name, info in var_info.items():
        n = info["n"]
        parts = [split_inputs[idx].reshape(-1, n, l) for idx, l in info["pos"]]
        vw, vb = params["var_fcs"][name]
        var_states[name] = dot(jnp.concatenate(parts, axis=-1), vw) + vb
    states = [var_states[k] for k in sorted(var_states.keys())]
    n_var = len(states)

    for layer in range(n_layers):
        lp = params["layers"][layer]
        residual = query
        xs = []
        for i in range(n_var):
            bp = lp["branches"][i]
            s = states[i]
            q = (dot(query, bp["wq"]) + bp["bq"]).reshape(batch, n_heads, 1, dph)
            k = (dot(s, bp["wk"]) + bp["bk"]).reshape(batch, -1, n_heads, dph).transpose(0, 2, 1, 3)
            v = (dot(s, bp["wv"]) + bp["bv"]).reshape(batch, -1, n_heads, dph).transpose(0, 2, 1, 3)
            w = ein("bhqd,bhkd->bhqk", q, k) / math.sqrt(dph)
            o = ein("bhqk,bhkd->bhqd", jax.nn.softmax(w, axis=-1), v)
            h = ln(o.reshape(batch, hidden_dim) + query, bp["attn_ln_g"], bp["attn_ln_b"])
            x = dot(jnp.maximum(dot(h, bp["w1"]) + bp["b1"], 0.0), bp["w2"]) + bp["b2"]
            xs.append(ln(x + h, bp["ln_g"], bp["ln_b"]))
        y = dot(jnp.concatenate(xs, axis=1), lp["fc_w"]) + lp["fc_b"]
        query = ln(y + residual, lp["ln_g"], lp["ln_b"])
    return query


# ----------------------------------------------------------------------------
if __name__ == "__main__":
    # small synthetic scheme: 2 fixed chunks (6 + 5 features),
    # 'enemy' objects (n=5) with features in two positions (4 + 2),
    # 'ally' objects (n=3) with 3 features.
    input_scheme = {
        "observation_pattern": [6, (4, "enemy"), 5, (3, "ally"), (2, "enemy")],
        "objects": {"enemy": 5, "ally": 3},
    }
    n_layers, hidden_dim, n_heads, batch = 2, 32, 2, 2

    split, fixed_idx, var_info, len_fixed = build_scheme(input_scheme)
    total_dim = sum(split)  # 6 + 20 + 5 + 9 + 10 = 50

    key = jax.random.PRNGKey(0)
    key, pkey, xkey = jax.random.split(key, 3)
    params = init_params(pkey, var_info, len_fixed, hidden_dim, n_layers)
    inputs = jax.random.normal(xkey, (batch, total_dim), jnp.float32)

    kwargs = dict(split=split, fixed_idx=fixed_idx, var_info=var_info,
                  hidden_dim=hidden_dim, n_layers=n_layers, n_heads=n_heads)

    out = multi_attention_forward(params, inputs, **kwargs)
    out = jax.block_until_ready(out)
    assert out.shape == (batch, hidden_dim)

    # (1) tight check against the precision-matched reference (same bf16 rounding at
    #     every matmul input, f32 accumulation) -> verifies the kernel's compute graph.
    ref_matched = reference_forward(params, inputs, bf16_matmul_inputs=True, **kwargs)
    np.testing.assert_allclose(np.asarray(out), np.asarray(ref_matched),
                               atol=3e-3, rtol=3e-3)

    # (2) bounded-quantization check against the full-f32 (HIGHEST precision) module;
    #     the only difference is the bf16 MXU feed requested by the perf review.
    ref_f32 = reference_forward(params, inputs, bf16_matmul_inputs=False, **kwargs)
    err = float(np.max(np.abs(np.asarray(out) - np.asarray(ref_f32))))
    np.testing.assert_allclose(np.asarray(out), np.asarray(ref_f32),
                               atol=1e-1, rtol=1e-1)
    print(f"max |kernel - f32 reference| = {err:.2e}")

    print("KERNEL_OK")
</pallas_src>

<mosaic_0001>
module attributes {stable_mosaic.version = 11 : i64} {
  func.func @fused_forward_kernel(%arg0: i32, %arg1: memref<2x11xbf16, #tpu.memory_space<vmem>>, %arg2: memref<6x3xbf16, #tpu.memory_space<vmem>>, %arg3: memref<10x6xbf16, #tpu.memory_space<vmem>>, %arg4: memref<2x32xf32, #tpu.memory_space<vmem>>, %arg5: memref<11x32xbf16, #tpu.memory_space<vmem>>, %arg6: memref<1x32xf32, #tpu.memory_space<vmem>>, %arg7: memref<3x32xbf16, #tpu.memory_space<vmem>>, %arg8: memref<6x32xbf16, #tpu.memory_space<vmem>>, %arg9: memref<1x32xf32, #tpu.memory_space<vmem>>, %arg10: memref<1x32xf32, #tpu.memory_space<vmem>>, %arg11: memref<1x32x64xbf16, #tpu.memory_space<vmem>>, %arg12: memref<1x1x64xf32, #tpu.memory_space<vmem>>, %arg13: memref<1x2x32x64xbf16, #tpu.memory_space<vmem>>, %arg14: memref<1x2x1x64xf32, #tpu.memory_space<vmem>>, %arg15: memref<1x2x1x32xf32, #tpu.memory_space<vmem>>, %arg16: memref<1x2x1x32xf32, #tpu.memory_space<vmem>>, %arg17: memref<1x2x32x32xbf16, #tpu.memory_space<vmem>>, %arg18: memref<1x2x1x32xf32, #tpu.memory_space<vmem>>, %arg19: memref<1x2x32x32xbf16, #tpu.memory_space<vmem>>, %arg20: memref<1x2x1x32xf32, #tpu.memory_space<vmem>>, %arg21: memref<1x2x1x32xf32, #tpu.memory_space<vmem>>, %arg22: memref<1x2x1x32xf32, #tpu.memory_space<vmem>>, %arg23: memref<1x2x32x32xbf16, #tpu.memory_space<vmem>>, %arg24: memref<1x1x32xf32, #tpu.memory_space<vmem>>, %arg25: memref<1x1x32xf32, #tpu.memory_space<vmem>>, %arg26: memref<1x1x32xf32, #tpu.memory_space<vmem>>, %arg27: memref<2x32xf32, #tpu.memory_space<vmem>>, %arg28: memref<2x32xf32, #tpu.memory_space<vmem>>, %arg29: memref<6x32xbf16, #tpu.memory_space<vmem>>, %arg30: memref<10x32xbf16, #tpu.memory_space<vmem>>) attributes {dimension_semantics = [#tpu.dimension_semantics<arbitrary>], iteration_bounds = array<i64: 2>, scalar_prefetch = 0 : i64, scratch_operands = 3 : i64, tpu.core_type = #tpu.core_type<tc>, window_params = [{pipeline_mode = #tpu.pipeline_mode<synchronous>, transform_indices = @transform_0, window_bounds = array<i64: 2, 11>}, {pipeline_mode = #tpu.pipeline_mode<synchronous>, transform_indices = @transform_1, window_bounds = array<i64: 6, 3>}, {pipeline_mode = #tpu.pipeline_mode<synchronous>, transform_indices = @transform_2, window_bounds = array<i64: 10, 6>}, {pipeline_mode = #tpu.pipeline_mode<synchronous>, transform_indices = @transform_3, window_bounds = array<i64: 2, 32>}, {pipeline_mode = #tpu.pipeline_mode<synchronous>, transform_indices = @transform_4, window_bounds = array<i64: 11, 32>}, {pipeline_mode = #tpu.pipeline_mode<synchronous>, transform_indices = @transform_5, window_bounds = array<i64: 1, 32>}, {pipeline_mode = #tpu.pipeline_mode<synchronous>, transform_indices = @transform_6, window_bounds = array<i64: 3, 32>}, {pipeline_mode = #tpu.pipeline_mode<synchronous>, transform_indices = @transform_7, window_bounds = array<i64: 6, 32>}, {pipeline_mode = #tpu.pipeline_mode<synchronous>, transform_indices = @transform_8, window_bounds = array<i64: 1, 32>}, {pipeline_mode = #tpu.pipeline_mode<synchronous>, transform_indices = @transform_9, window_bounds = array<i64: 1, 32>}, {transform_indices = @transform_10, window_bounds = array<i64: 1, 32, 64>}, {transform_indices = @transform_11, window_bounds = array<i64: 1, 1, 64>}, {transform_indices = @transform_12, window_bounds = array<i64: 1, 2, 32, 64>}, {transform_indices = @transform_13, window_bounds = array<i64: 1, 2, 1, 64>}, {transform_indices = @transform_14, window_bounds = array<i64: 1, 2, 1, 32>}, {transform_indices = @transform_15, window_bounds = array<i64: 1, 2, 1, 32>}, {transform_indices = @transform_16, window_bounds = array<i64: 1, 2, 32, 32>}, {transform_indices = @transform_17, window_bounds = array<i64: 1, 2, 1, 32>}, {transform_indices = @transform_18, window_bounds = array<i64: 1, 2, 32, 32>}, {transform_indices = @transform_19, window_bounds = array<i64: 1, 2, 1, 32>}, {transform_indices = @transform_20, window_bounds = array<i64: 1, 2, 1, 32>}, {transform_indices = @transform_21, window_bounds = array<i64: 1, 2, 1, 32>}, {transform_indices = @transform_22, window_bounds = array<i64: 1, 2, 32, 32>}, {transform_indices = @transform_23, window_bounds = array<i64: 1, 1, 32>}, {transform_indices = @transform_24, window_bounds = array<i64: 1, 1, 32>}, {transform_indices = @transform_25, window_bounds = array<i64: 1, 1, 32>}, {pipeline_mode = #tpu.pipeline_mode<synchronous>, transform_indices = @transform_26, window_bounds = array<i64: 2, 32>}]} {
    %c0_i32 = arith.constant 0 : i32
    %0 = arith.cmpi eq, %arg0, %c0_i32 : i32
    %1 = arith.extui %0 : i1 to i32
    %c0_i32_0 = arith.constant 0 : i32
    %2 = arith.cmpi ne, %1, %c0_i32_0 : i32
    scf.if %2 {
      %c0_159 = arith.constant 0 : index
      %c0_160 = arith.constant 0 : index
      %259 = vector.load %arg1[%c0_159, %c0_160] : memref<2x11xbf16, #tpu.memory_space<vmem>>, vector<2x11xbf16>
      %c0_161 = arith.constant 0 : index
      %c0_162 = arith.constant 0 : index
      %260 = vector.load %arg5[%c0_161, %c0_162] : memref<11x32xbf16, #tpu.memory_space<vmem>>, vector<11x32xbf16>
      %cst_163 = arith.constant dense<0.000000e+00> : vector<2x32xf32>
      %261 = tpu.matmul %259, %260, %cst_163 {dimension_numbers = #tpu.dot_dimension_numbers<[1], [0], [0], [1], [0, 0, 1, 1], [], []>} : vector<2x11xbf16>, vector<11x32xbf16>, vector<2x32xf32> -> vector<2x32xf32>
      %c0_164 = arith.constant 0 : index
      %c0_165 = arith.constant 0 : index
      %262 = vector.load %arg6[%c0_164, %c0_165] : memref<1x32xf32, #tpu.memory_space<vmem>>, vector<1x32xf32>
      %263 = vector.broadcast %262 : vector<1x32xf32> to vector<2x32xf32>
      %264 = arith.addf %261, %263 : vector<2x32xf32>
      %c0_166 = arith.constant 0 : index
      %c0_167 = arith.constant 0 : index
      %265 = vector.load %arg28[%c0_166, %c0_167] : memref<2x32xf32, #tpu.memory_space<vmem>>, vector<2x32xf32>
      tpu.vector_store %arg28[%c0_166, %c0_167], %264 {strides = array<i32>} : memref<2x32xf32, #tpu.memory_space<vmem>>, vector<2x32xf32>,
      %c0_168 = arith.constant 0 : index
      %c0_169 = arith.constant 0 : index
      %266 = vector.load %arg2[%c0_168, %c0_169] : memref<6x3xbf16, #tpu.memory_space<vmem>>, vector<6x3xbf16>
      %c0_170 = arith.constant 0 : index
      %c0_171 = arith.constant 0 : index
      %267 = vector.load %arg7[%c0_170, %c0_171] : memref<3x32xbf16, #tpu.memory_space<vmem>>, vector<3x32xbf16>
      %cst_172 = arith.constant dense<0.000000e+00> : vector<6x32xf32>
      %268 = tpu.matmul %266, %267, %cst_172 {dimension_numbers = #tpu.dot_dimension_numbers<[1], [0], [0], [1], [0, 0, 1, 1], [], []>} : vector<6x3xbf16>, vector<3x32xbf16>, vector<6x32xf32> -> vector<6x32xf32>
      %c0_173 = arith.constant 0 : index
      %c0_174 = arith.constant 0 : index
      %269 = vector.load %arg9[%c0_173, %c0_174] : memref<1x32xf32, #tpu.memory_space<vmem>>, vector<1x32xf32>
      %270 = vector.broadcast %269 : vector<1x32xf32> to vector<6x32xf32>
      %271 = arith.addf %268, %270 : vector<6x32xf32>
      %272 = arith.truncf %271 : vector<6x32xf32> to vector<6x32xbf16>
      %c0_175 = arith.constant 0 : index
      %c0_176 = arith.constant 0 : index
      %273 = vector.load %arg29[%c0_175, %c0_176] : memref<6x32xbf16, #tpu.memory_space<vmem>>, vector<6x32xbf16>
      tpu.vector_store %arg29[%c0_175, %c0_176], %272 {strides = array<i32>} : memref<6x32xbf16, #tpu.memory_space<vmem>>, vector<6x32xbf16>,
      %c0_177 = arith.constant 0 : index
      %c0_178 = arith.constant 0 : index
      %274 = vector.load %arg3[%c0_177, %c0_178] : memref<10x6xbf16, #tpu.memory_space<vmem>>, vector<10x6xbf16>
      %c0_179 = arith.constant 0 : index
      %c0_180 = arith.constant 0 : index
      %275 = vector.load %arg8[%c0_179, %c0_180] : memref<6x32xbf16, #tpu.memory_space<vmem>>, vector<6x32xbf16>
      %cst_181 = arith.constant dense<0.000000e+00> : vector<10x32xf32>
      %276 = tpu.matmul %274, %275, %cst_181 {dimension_numbers = #tpu.dot_dimension_numbers<[1], [0], [0], [1], [0, 0, 1, 1], [], []>} : vector<10x6xbf16>, vector<6x32xbf16>, vector<10x32xf32> -> vector<10x32xf32>
      %c0_182 = arith.constant 0 : index
      %c0_183 = arith.constant 0 : index
      %277 = vector.load %arg10[%c0_182, %c0_183] : memref<1x32xf32, #tpu.memory_space<vmem>>, vector<1x32xf32>
      %278 = vector.broadcast %277 : vector<1x32xf32> to vector<10x32xf32>
      %279 = arith.addf %276, %278 : vector<10x32xf32>
      %280 = arith.truncf %279 : vector<10x32xf32> to vector<10x32xbf16>
      %c0_184 = arith.constant 0 : index
      %c0_185 = arith.constant 0 : index
      %281 = vector.load %arg30[%c0_184, %c0_185] : memref<10x32xbf16, #tpu.memory_space<vmem>>, vector<10x32xbf16>
      tpu.vector_store %arg30[%c0_184, %c0_185], %280 {strides = array<i32>} : memref<10x32xbf16, #tpu.memory_space<vmem>>, vector<10x32xbf16>,
    } else {
    }
    %c0 = arith.constant 0 : index
    %c0_1 = arith.constant 0 : index
    %3 = vector.load %arg4[%c0, %c0_1] : memref<2x32xf32, #tpu.memory_space<vmem>>, vector<2x32xf32>
    %c0_2 = arith.constant 0 : index
    %c0_3 = arith.constant 0 : index
    %4 = vector.load %arg28[%c0_2, %c0_3] : memref<2x32xf32, #tpu.memory_space<vmem>>, vector<2x32xf32>
    %c0_4 = arith.constant 0 : index
    %c0_5 = arith.constant 0 : index
    %c0_6 = arith.constant 0 : index
    %5 = vector.load %arg11[%c0_4, %c0_5, %c0_6] : memref<1x32x64xbf16, #tpu.memory_space<vmem>>, vector<1x32x64xbf16>
    %6 = vector.shape_cast %5 : vector<1x32x64xbf16> to vector<32x64xbf16>
    %7 = arith.truncf %4 : vector<2x32xf32> to vector<2x32xbf16>
    %cst = arith.constant dense<0.000000e+00> : vector<2x64xf32>
    %8 = tpu.matmul %7, %6, %cst {dimension_numbers = #tpu.dot_dimension_numbers<[1], [0], [0], [1], [0, 0, 1, 1], [], []>} : vector<2x32xbf16>, vector<32x64xbf16>, vector<2x64xf32> -> vector<2x64xf32>
    %c0_7 = arith.constant 0 : index
    %c0_8 = arith.constant 0 : index
    %c0_9 = arith.constant 0 : index
    %9 = vector.load %arg12[%c0_7, %c0_8, %c0_9] : memref<1x1x64xf32, #tpu.memory_space<vmem>>, vector<1x1x64xf32>
    %10 = vector.shape_cast %9 : vector<1x1x64xf32> to vector<1x64xf32>
    %11 = vector.broadcast %10 : vector<1x64xf32> to vector<2x64xf32>
    %12 = arith.addf %8, %11 : vector<2x64xf32>
    %c0_10 = arith.constant 0 : index
    %c0_11 = arith.constant 0 : index
    %c0_12 = arith.constant 0 : index
    %13 = vector.load %arg24[%c0_10, %c0_11, %c0_12] : memref<1x1x32xf32, #tpu.memory_space<vmem>>, vector<1x1x32xf32>
    %14 = vector.shape_cast %13 : vector<1x1x32xf32> to vector<1x32xf32>
    %c0_13 = arith.constant 0 : index
    %c0_14 = arith.constant 0 : index
    %15 = vector.load %arg29[%c0_13, %c0_14] : memref<6x32xbf16, #tpu.memory_space<vmem>>, vector<6x32xbf16>
    %c0_15 = arith.constant 0 : index
    %c0_16 = arith.constant 0 : index
    %c0_17 = arith.constant 0 : index
    %c0_18 = arith.constant 0 : index
    %16 = vector.load %arg13[%c0_15, %c0_16, %c0_17, %c0_18] : memref<1x2x32x64xbf16, #tpu.memory_space<vmem>>, vector<1x1x32x64xbf16>
    %17 = vector.shape_cast %16 : vector<1x1x32x64xbf16> to vector<32x64xbf16>
    %cst_19 = arith.constant dense<0.000000e+00> : vector<6x64xf32>
    %18 = tpu.matmul %15, %17, %cst_19 {dimension_numbers = #tpu.dot_dimension_numbers<[1], [0], [0], [1], [0, 0, 1, 1], [], []>} : vector<6x32xbf16>, vector<32x64xbf16>, vector<6x64xf32> -> vector<6x64xf32>
    %c0_20 = arith.constant 0 : index
    %c0_21 = arith.constant 0 : index
    %c0_22 = arith.constant 0 : index
    %c0_23 = arith.constant 0 : index
    %19 = vector.load %arg14[%c0_20, %c0_21, %c0_22, %c0_23] : memref<1x2x1x64xf32, #tpu.memory_space<vmem>>, vector<1x1x1x64xf32>
    %20 = vector.shape_cast %19 : vector<1x1x1x64xf32> to vector<1x64xf32>
    %21 = vector.broadcast %20 : vector<1x64xf32> to vector<6x64xf32>
    %22 = arith.addf %18, %21 : vector<6x64xf32>
    %23 = vector.shape_cast %22 : vector<6x64xf32> to vector<2x3x64xf32>
    %24 = arith.truncf %23 : vector<2x3x64xf32> to vector<2x3x64xbf16>
    %25 = vector.extract_strided_slice %24 {offsets = [0, 0, 0], sizes = [2, 3, 32], strides = [1, 1, 1]} : vector<2x3x64xbf16> to vector<2x3x32xbf16>
    %26 = vector.extract_strided_slice %24 {offsets = [0, 0, 32], sizes = [2, 3, 32], strides = [1, 1, 1]} : vector<2x3x64xbf16> to vector<2x3x32xbf16>
    %27 = vector.extract_strided_slice %12 {offsets = [0, 0], sizes = [2, 32], strides = [1, 1]} : vector<2x64xf32> to vector<2x32xf32>
    %28 = vector.shape_cast %27 : vector<2x32xf32> to vector<2x1x32xf32>
    %29 = vector.shape_cast %3 : vector<2x32xf32> to vector<1x2x32xf32>
    %30 = vector.broadcast %28 : vector<2x1x32xf32> to vector<2x2x32xf32>
    %31 = vector.broadcast %29 : vector<1x2x32xf32> to vector<2x2x32xf32>
    %32 = arith.mulf %30, %31 : vector<2x2x32xf32>
    %33 = arith.truncf %32 : vector<2x2x32xf32> to vector<2x2x32xbf16>
    "tpu.trace_start"() <{level = 10 : i32, message = "bhd,bld->bhl"}> : () -> ()
    %cst_24 = arith.constant dense<0.000000e+00> : vector<2x2x3xf32>
    %34 = tpu.matmul %33, %25, %cst_24 {dimension_numbers = #tpu.dot_dimension_numbers<[2], [2], [1], [1], [0, 0, 0, 1, 1, 1], [0], [0]>} : vector<2x2x32xbf16>, vector<2x3x32xbf16>, vector<2x2x3xf32> -> vector<2x2x3xf32>
    "tpu.trace_stop"() : () -> ()
    %cst_25 = arith.constant dense<0xFF800000> : vector<2x2xf32>
    %35 = vector.multi_reduction <maximumf>, %34, %cst_25 [2] : vector<2x2x3xf32> to vector<2x2xf32>
    %36 = vector.shape_cast %35 : vector<2x2xf32> to vector<2x2x1xf32>
    %37 = vector.broadcast %36 : vector<2x2x1xf32> to vector<2x2x3xf32>
    %38 = arith.subf %34, %37 : vector<2x2x3xf32>
    %39 = math.exp %38 : vector<2x2x3xf32>
    %cst_26 = arith.constant dense<0.000000e+00> : vector<2x2xf32>
    %40 = vector.multi_reduction <add>, %39, %cst_26 [2] : vector<2x2x3xf32> to vector<2x2xf32>
    %41 = vector.shape_cast %40 : vector<2x2xf32> to vector<2x2x1xf32>
    %42 = vector.broadcast %41 : vector<2x2x1xf32> to vector<2x2x3xf32>
    %43 = arith.divf %39, %42 : vector<2x2x3xf32>
    %44 = arith.truncf %43 : vector<2x2x3xf32> to vector<2x2x3xbf16>
    "tpu.trace_start"() <{level = 10 : i32, message = "bhl,bld->bhd"}> : () -> ()
    %cst_27 = arith.constant dense<0.000000e+00> : vector<2x2x32xf32>
    %45 = tpu.matmul %44, %26, %cst_27 {dimension_numbers = #tpu.dot_dimension_numbers<[2], [1], [1], [2], [0, 0, 0, 1, 1, 2], [0], [0]>} : vector<2x2x3xbf16>, vector<2x3x32xbf16>, vector<2x2x32xf32> -> vector<2x2x32xf32>
    "tpu.trace_stop"() : () -> ()
    %46 = vector.shape_cast %3 : vector<2x32xf32> to vector<1x2x32xf32>
    %47 = vector.broadcast %46 : vector<1x2x32xf32> to vector<2x2x32xf32>
    %48 = arith.mulf %45, %47 : vector<2x2x32xf32>
    %cst_28 = arith.constant dense<0.000000e+00> : vector<2x32xf32>
    %49 = vector.multi_reduction <add>, %48, %cst_28 [1] : vector<2x2x32xf32> to vector<2x32xf32>
    %50 = arith.addf %49, %4 : vector<2x32xf32>
    %c0_29 = arith.constant 0 : index
    %c0_30 = arith.constant 0 : index
    %c0_31 = arith.constant 0 : index
    %c0_32 = arith.constant 0 : index
    %51 = vector.load %arg15[%c0_29, %c0_30, %c0_31, %c0_32] : memref<1x2x1x32xf32, #tpu.memory_space<vmem>>, vector<1x1x1x32xf32>
    %52 = vector.shape_cast %51 : vector<1x1x1x32xf32> to vector<1x32xf32>
    %c0_33 = arith.constant 0 : index
    %c0_34 = arith.constant 0 : index
    %c0_35 = arith.constant 0 : index
    %c0_36 = arith.constant 0 : index
    %53 = vector.load %arg16[%c0_33, %c0_34, %c0_35, %c0_36] : memref<1x2x1x32xf32, #tpu.memory_space<vmem>>, vector<1x1x1x32xf32>
    %54 = vector.shape_cast %53 : vector<1x1x1x32xf32> to vector<1x32xf32>
    %cst_37 = arith.constant dense<0.000000e+00> : vector<2xf32>
    %55 = vector.multi_reduction <add>, %50, %cst_37 [1] : vector<2x32xf32> to vector<2xf32>
    %56 = vector.shape_cast %55 : vector<2xf32> to vector<2x1xf32>
    %cst_38 = arith.constant 3.200000e+01 : f32
    %57 = vector.broadcast %cst_38 : f32 to vector<2x1xf32>
    %58 = arith.divf %56, %57 : vector<2x1xf32>
    %59 = vector.broadcast %58 : vector<2x1xf32> to vector<2x32xf32>
    %60 = arith.subf %50, %59 : vector<2x32xf32>
    %61 = arith.mulf %60, %60 : vector<2x32xf32>
    %cst_39 = arith.constant dense<0.000000e+00> : vector<2xf32>
    %62 = vector.multi_reduction <add>, %61, %cst_39 [1] : vector<2x32xf32> to vector<2xf32>
    %63 = vector.shape_cast %62 : vector<2xf32> to vector<2x1xf32>
    %cst_40 = arith.constant 3.200000e+01 : f32
    %64 = vector.broadcast %cst_40 : f32 to vector<2x1xf32>
    %65 = arith.divf %63, %64 : vector<2x1xf32>
    %cst_41 = arith.constant 9.99999974E-6 : f32
    %66 = vector.broadcast %cst_41 : f32 to vector<2x1xf32>
    %67 = arith.addf %65, %66 : vector<2x1xf32>
    %68 = math.rsqrt %67 : vector<2x1xf32>
    %69 = vector.broadcast %68 : vector<2x1xf32> to vector<2x32xf32>
    %70 = arith.mulf %60, %69 : vector<2x32xf32>
    %71 = vector.broadcast %52 : vector<1x32xf32> to vector<2x32xf32>
    %72 = arith.mulf %70, %71 : vector<2x32xf32>
    %73 = vector.broadcast %54 : vector<1x32xf32> to vector<2x32xf32>
    %74 = arith.addf %72, %73 : vector<2x32xf32>
    %c0_42 = arith.constant 0 : index
    %c0_43 = arith.constant 0 : index
    %c0_44 = arith.constant 0 : index
    %c0_45 = arith.constant 0 : index
    %75 = vector.load %arg17[%c0_42, %c0_43, %c0_44, %c0_45] : memref<1x2x32x32xbf16, #tpu.memory_space<vmem>>, vector<1x1x32x32xbf16>
    %76 = vector.shape_cast %75 : vector<1x1x32x32xbf16> to vector<32x32xbf16>
    %77 = arith.truncf %74 : vector<2x32xf32> to vector<2x32xbf16>
    %cst_46 = arith.constant dense<0.000000e+00> : vector<2x32xf32>
    %78 = tpu.matmul %77, %76, %cst_46 {dimension_numbers = #tpu.dot_dimension_numbers<[1], [0], [0], [1], [0, 0, 1, 1], [], []>} : vector<2x32xbf16>, vector<32x32xbf16>, vector<2x32xf32> -> vector<2x32xf32>
    %c0_47 = arith.constant 0 : index
    %c0_48 = arith.constant 0 : index
    %c0_49 = arith.constant 0 : index
    %c0_50 = arith.constant 0 : index
    %79 = vector.load %arg18[%c0_47, %c0_48, %c0_49, %c0_50] : memref<1x2x1x32xf32, #tpu.memory_space<vmem>>, vector<1x1x1x32xf32>
    %80 = vector.shape_cast %79 : vector<1x1x1x32xf32> to vector<1x32xf32>
    %81 = vector.broadcast %80 : vector<1x32xf32> to vector<2x32xf32>
    %82 = arith.addf %78, %81 : vector<2x32xf32>
    %cst_51 = arith.constant 0.000000e+00 : f32
    %83 = vector.broadcast %cst_51 : f32 to vector<2x32xf32>
    %84 = arith.maximumf %82, %83 : vector<2x32xf32>
    %c0_52 = arith.constant 0 : index
    %c0_53 = arith.constant 0 : index
    %c0_54 = arith.constant 0 : index
    %c0_55 = arith.constant 0 : index
    %85 = vector.load %arg19[%c0_52, %c0_53, %c0_54, %c0_55] : memref<1x2x32x32xbf16, #tpu.memory_space<vmem>>, vector<1x1x32x32xbf16>
    %86 = vector.shape_cast %85 : vector<1x1x32x32xbf16> to vector<32x32xbf16>
    %87 = arith.truncf %84 : vector<2x32xf32> to vector<2x32xbf16>
    %cst_56 = arith.constant dense<0.000000e+00> : vector<2x32xf32>
    %88 = tpu.matmul %87, %86, %cst_56 {dimension_numbers = #tpu.dot_dimension_numbers<[1], [0], [0], [1], [0, 0, 1, 1], [], []>} : vector<2x32xbf16>, vector<32x32xbf16>, vector<2x32xf32> -> vector<2x32xf32>
    %c0_57 = arith.constant 0 : index
    %c0_58 = arith.constant 0 : index
    %c0_59 = arith.constant 0 : index
    %c0_60 = arith.constant 0 : index
    %89 = vector.load %arg20[%c0_57, %c0_58, %c0_59, %c0_60] : memref<1x2x1x32xf32, #tpu.memory_space<vmem>>, vector<1x1x1x32xf32>
    %90 = vector.shape_cast %89 : vector<1x1x1x32xf32> to vector<1x32xf32>
    %91 = vector.broadcast %90 : vector<1x32xf32> to vector<2x32xf32>
    %92 = arith.addf %88, %91 : vector<2x32xf32>
    %93 = arith.addf %92, %74 : vector<2x32xf32>
    %c0_61 = arith.constant 0 : index
    %c0_62 = arith.constant 0 : index
    %c0_63 = arith.constant 0 : index
    %c0_64 = arith.constant 0 : index
    %94 = vector.load %arg21[%c0_61, %c0_62, %c0_63, %c0_64] : memref<1x2x1x32xf32, #tpu.memory_space<vmem>>, vector<1x1x1x32xf32>
    %95 = vector.shape_cast %94 : vector<1x1x1x32xf32> to vector<1x32xf32>
    %c0_65 = arith.constant 0 : index
    %c0_66 = arith.constant 0 : index
    %c0_67 = arith.constant 0 : index
    %c0_68 = arith.constant 0 : index
    %96 = vector.load %arg22[%c0_65, %c0_66, %c0_67, %c0_68] : memref<1x2x1x32xf32, #tpu.memory_space<vmem>>, vector<1x1x1x32xf32>
    %97 = vector.shape_cast %96 : vector<1x1x1x32xf32> to vector<1x32xf32>
    %cst_69 = arith.constant dense<0.000000e+00> : vector<2xf32>
    %98 = vector.multi_reduction <add>, %93, %cst_69 [1] : vector<2x32xf32> to vector<2xf32>
    %99 = vector.shape_cast %98 : vector<2xf32> to vector<2x1xf32>
    %cst_70 = arith.constant 3.200000e+01 : f32
    %100 = vector.broadcast %cst_70 : f32 to vector<2x1xf32>
    %101 = arith.divf %99, %100 : vector<2x1xf32>
    %102 = vector.broadcast %101 : vector<2x1xf32> to vector<2x32xf32>
    %103 = arith.subf %93, %102 : vector<2x32xf32>
    %104 = arith.mulf %103, %103 : vector<2x32xf32>
    %cst_71 = arith.constant dense<0.000000e+00> : vector<2xf32>
    %105 = vector.multi_reduction <add>, %104, %cst_71 [1] : vector<2x32xf32> to vector<2xf32>
    %106 = vector.shape_cast %105 : vector<2xf32> to vector<2x1xf32>
    %cst_72 = arith.constant 3.200000e+01 : f32
    %107 = vector.broadcast %cst_72 : f32 to vector<2x1xf32>
    %108 = arith.divf %106, %107 : vector<2x1xf32>
    %cst_73 = arith.constant 9.99999974E-6 : f32
    %109 = vector.broadcast %cst_73 : f32 to vector<2x1xf32>
    %110 = arith.addf %108, %109 : vector<2x1xf32>
    %111 = math.rsqrt %110 : vector<2x1xf32>
    %112 = vector.broadcast %111 : vector<2x1xf32> to vector<2x32xf32>
    %113 = arith.mulf %103, %112 : vector<2x32xf32>
    %114 = vector.broadcast %95 : vector<1x32xf32> to vector<2x32xf32>
    %115 = arith.mulf %113, %114 : vector<2x32xf32>
    %116 = vector.broadcast %97 : vector<1x32xf32> to vector<2x32xf32>
    %117 = arith.addf %115, %116 : vector<2x32xf32>
    %c0_74 = arith.constant 0 : index
    %c0_75 = arith.constant 0 : index
    %c0_76 = arith.constant 0 : index
    %c0_77 = arith.constant 0 : index
    %118 = vector.load %arg23[%c0_74, %c0_75, %c0_76, %c0_77] : memref<1x2x32x32xbf16, #tpu.memory_space<vmem>>, vector<1x1x32x32xbf16>
    %119 = vector.shape_cast %118 : vector<1x1x32x32xbf16> to vector<32x32xbf16>
    %120 = arith.truncf %117 : vector<2x32xf32> to vector<2x32xbf16>
    %cst_78 = arith.constant dense<0.000000e+00> : vector<2x32xf32>
    %121 = tpu.matmul %120, %119, %cst_78 {dimension_numbers = #tpu.dot_dimension_numbers<[1], [0], [0], [1], [0, 0, 1, 1], [], []>} : vector<2x32xbf16>, vector<32x32xbf16>, vector<2x32xf32> -> vector<2x32xf32>
    %122 = vector.broadcast %14 : vector<1x32xf32> to vector<2x32xf32>
    %123 = arith.addf %122, %121 : vector<2x32xf32>
    %c0_79 = arith.constant 0 : index
    %c0_80 = arith.constant 0 : index
    %124 = vector.load %arg30[%c0_79, %c0_80] : memref<10x32xbf16, #tpu.memory_space<vmem>>, vector<10x32xbf16>
    %c0_81 = arith.constant 0 : index
    %c1 = arith.constant 1 : index
    %c0_82 = arith.constant 0 : index
    %c0_83 = arith.constant 0 : index
    %125 = vector.load %arg13[%c0_81, %c1, %c0_82, %c0_83] : memref<1x2x32x64xbf16, #tpu.memory_space<vmem>>, vector<1x1x32x64xbf16>
    %126 = vector.shape_cast %125 : vector<1x1x32x64xbf16> to vector<32x64xbf16>
    %cst_84 = arith.constant dense<0.000000e+00> : vector<10x64xf32>
    %127 = tpu.matmul %124, %126, %cst_84 {dimension_numbers = #tpu.dot_dimension_numbers<[1], [0], [0], [1], [0, 0, 1, 1], [], []>} : vector<10x32xbf16>, vector<32x64xbf16>, vector<10x64xf32> -> vector<10x64xf32>
    %c0_85 = arith.constant 0 : index
    %c1_86 = arith.constant 1 : index
    %c0_87 = arith.constant 0 : index
    %c0_88 = arith.constant 0 : index
    %128 = vector.load %arg14[%c0_85, %c1_86, %c0_87, %c0_88] : memref<1x2x1x64xf32, #tpu.memory_space<vmem>>, vector<1x1x1x64xf32>
    %129 = vector.shape_cast %128 : vector<1x1x1x64xf32> to vector<1x64xf32>
    %130 = vector.broadcast %129 : vector<1x64xf32> to vector<10x64xf32>
    %131 = arith.addf %127, %130 : vector<10x64xf32>
    %132 = vector.shape_cast %131 : vector<10x64xf32> to vector<2x5x64xf32>
    %133 = arith.truncf %132 : vector<2x5x64xf32> to vector<2x5x64xbf16>
    %134 = vector.extract_strided_slice %133 {offsets = [0, 0, 0], sizes = [2, 5, 32], strides = [1, 1, 1]} : vector<2x5x64xbf16> to vector<2x5x32xbf16>
    %135 = vector.extract_strided_slice %133 {offsets = [0, 0, 32], sizes = [2, 5, 32], strides = [1, 1, 1]} : vector<2x5x64xbf16> to vector<2x5x32xbf16>
    %136 = vector.extract_strided_slice %12 {offsets = [0, 32], sizes = [2, 32], strides = [1, 1]} : vector<2x64xf32> to vector<2x32xf32>
    %137 = vector.shape_cast %136 : vector<2x32xf32> to vector<2x1x32xf32>
    %138 = vector.shape_cast %3 : vector<2x32xf32> to vector<1x2x32xf32>
    %139 = vector.broadcast %137 : vector<2x1x32xf32> to vector<2x2x32xf32>
    %140 = vector.broadcast %138 : vector<1x2x32xf32> to vector<2x2x32xf32>
    %141 = arith.mulf %139, %140 : vector<2x2x32xf32>
    %142 = arith.truncf %141 : vector<2x2x32xf32> to vector<2x2x32xbf16>
    "tpu.trace_start"() <{level = 10 : i32, message = "bhd,bld->bhl"}> : () -> ()
    %cst_89 = arith.constant dense<0.000000e+00> : vector<2x2x5xf32>
    %143 = tpu.matmul %142, %134, %cst_89 {dimension_numbers = #tpu.dot_dimension_numbers<[2], [2], [1], [1], [0, 0, 0, 1, 1, 1], [0], [0]>} : vector<2x2x32xbf16>, vector<2x5x32xbf16>, vector<2x2x5xf32> -> vector<2x2x5xf32>
    "tpu.trace_stop"() : () -> ()
    %cst_90 = arith.constant dense<0xFF800000> : vector<2x2xf32>
    %144 = vector.multi_reduction <maximumf>, %143, %cst_90 [2] : vector<2x2x5xf32> to vector<2x2xf32>
    %145 = vector.shape_cast %144 : vector<2x2xf32> to vector<2x2x1xf32>
    %146 = vector.broadcast %145 : vector<2x2x1xf32> to vector<2x2x5xf32>
    %147 = arith.subf %143, %146 : vector<2x2x5xf32>
    %148 = math.exp %147 : vector<2x2x5xf32>
    %cst_91 = arith.constant dense<0.000000e+00> : vector<2x2xf32>
    %149 = vector.multi_reduction <add>, %148, %cst_91 [2] : vector<2x2x5xf32> to vector<2x2xf32>
    %150 = vector.shape_cast %149 : vector<2x2xf32> to vector<2x2x1xf32>
    %151 = vector.broadcast %150 : vector<2x2x1xf32> to vector<2x2x5xf32>
    %152 = arith.divf %148, %151 : vector<2x2x5xf32>
    %153 = arith.truncf %152 : vector<2x2x5xf32> to vector<2x2x5xbf16>
    "tpu.trace_start"() <{level = 10 : i32, message = "bhl,bld->bhd"}> : () -> ()
    %cst_92 = arith.constant dense<0.000000e+00> : vector<2x2x32xf32>
    %154 = tpu.matmul %153, %135, %cst_92 {dimension_numbers = #tpu.dot_dimension_numbers<[2], [1], [1], [2], [0, 0, 0, 1, 1, 2], [0], [0]>} : vector<2x2x5xbf16>, vector<2x5x32xbf16>, vector<2x2x32xf32> -> vector<2x2x32xf32>
    "tpu.trace_stop"() : () -> ()
    %155 = vector.shape_cast %3 : vector<2x32xf32> to vector<1x2x32xf32>
    %156 = vector.broadcast %155 : vector<1x2x32xf32> to vector<2x2x32xf32>
    %157 = arith.mulf %154, %156 : vector<2x2x32xf32>
    %cst_93 = arith.constant dense<0.000000e+00> : vector<2x32xf32>
    %158 = vector.multi_reduction <add>, %157, %cst_93 [1] : vector<2x2x32xf32> to vector<2x32xf32>
    %159 = arith.addf %158, %4 : vector<2x32xf32>
    %c0_94 = arith.constant 0 : index
    %c1_95 = arith.constant 1 : index
    %c0_96 = arith.constant 0 : index
    %c0_97 = arith.constant 0 : index
    %160 = vector.load %arg15[%c0_94, %c1_95, %c0_96, %c0_97] : memref<1x2x1x32xf32, #tpu.memory_space<vmem>>, vector<1x1x1x32xf32>
    %161 = vector.shape_cast %160 : vector<1x1x1x32xf32> to vector<1x32xf32>
    %c0_98 = arith.constant 0 : index
    %c1_99 = arith.constant 1 : index
    %c0_100 = arith.constant 0 : index
    %c0_101 = arith.constant 0 : index
    %162 = vector.load %arg16[%c0_98, %c1_99, %c0_100, %c0_101] : memref<1x2x1x32xf32, #tpu.memory_space<vmem>>, vector<1x1x1x32xf32>
    %163 = vector.shape_cast %162 : vector<1x1x1x32xf32> to vector<1x32xf32>
    %cst_102 = arith.constant dense<0.000000e+00> : vector<2xf32>
    %164 = vector.multi_reduction <add>, %159, %cst_102 [1] : vector<2x32xf32> to vector<2xf32>
    %165 = vector.shape_cast %164 : vector<2xf32> to vector<2x1xf32>
    %cst_103 = arith.constant 3.200000e+01 : f32
    %166 = vector.broadcast %cst_103 : f32 to vector<2x1xf32>
    %167 = arith.divf %165, %166 : vector<2x1xf32>
    %168 = vector.broadcast %167 : vector<2x1xf32> to vector<2x32xf32>
    %169 = arith.subf %159, %168 : vector<2x32xf32>
    %170 = arith.mulf %169, %169 : vector<2x32xf32>
    %cst_104 = arith.constant dense<0.000000e+00> : vector<2xf32>
    %171 = vector.multi_reduction <add>, %170, %cst_104 [1] : vector<2x32xf32> to vector<2xf32>
    %172 = vector.shape_cast %171 : vector<2xf32> to vector<2x1xf32>
    %cst_105 = arith.constant 3.200000e+01 : f32
    %173 = vector.broadcast %cst_105 : f32 to vector<2x1xf32>
    %174 = arith.divf %172, %173 : vector<2x1xf32>
    %cst_106 = arith.constant 9.99999974E-6 : f32
    %175 = vector.broadcast %cst_106 : f32 to vector<2x1xf32>
    %176 = arith.addf %174, %175 : vector<2x1xf32>
    %177 = math.rsqrt %176 : vector<2x1xf32>
    %178 = vector.broadcast %177 : vector<2x1xf32> to vector<2x32xf32>
    %179 = arith.mulf %169, %178 : vector<2x32xf32>
    %180 = vector.broadcast %161 : vector<1x32xf32> to vector<2x32xf32>
    %181 = arith.mulf %179, %180 : vector<2x32xf32>
    %182 = vector.broadcast %163 : vector<1x32xf32> to vector<2x32xf32>
    %183 = arith.addf %181, %182 : vector<2x32xf32>
    %c0_107 = arith.constant 0 : index
    %c1_108 = arith.constant 1 : index
    %c0_109 = arith.constant 0 : index
    %c0_110 = arith.constant 0 : index
    %184 = vector.load %arg17[%c0_107, %c1_108, %c0_109, %c0_110] : memref<1x2x32x32xbf16, #tpu.memory_space<vmem>>, vector<1x1x32x32xbf16>
    %185 = vector.shape_cast %184 : vector<1x1x32x32xbf16> to vector<32x32xbf16>
    %186 = arith.truncf %183 : vector<2x32xf32> to vector<2x32xbf16>
    %cst_111 = arith.constant dense<0.000000e+00> : vector<2x32xf32>
    %187 = tpu.matmul %186, %185, %cst_111 {dimension_numbers = #tpu.dot_dimension_numbers<[1], [0], [0], [1], [0, 0, 1, 1], [], []>} : vector<2x32xbf16>, vector<32x32xbf16>, vector<2x32xf32> -> vector<2x32xf32>
    %c0_112 = arith.constant 0 : index
    %c1_113 = arith.constant 1 : index
    %c0_114 = arith.constant 0 : index
    %c0_115 = arith.constant 0 : index
    %188 = vector.load %arg18[%c0_112, %c1_113, %c0_114, %c0_115] : memref<1x2x1x32xf32, #tpu.memory_space<vmem>>, vector<1x1x1x32xf32>
    %189 = vector.shape_cast %188 : vector<1x1x1x32xf32> to vector<1x32xf32>
    %190 = vector.broadcast %189 : vector<1x32xf32> to vector<2x32xf32>
    %191 = arith.addf %187, %190 : vector<2x32xf32>
    %cst_116 = arith.constant 0.000000e+00 : f32
    %192 = vector.broadcast %cst_116 : f32 to vector<2x32xf32>
    %193 = arith.maximumf %191, %192 : vector<2x32xf32>
    %c0_117 = arith.constant 0 : index
    %c1_118 = arith.constant 1 : index
    %c0_119 = arith.constant 0 : index
    %c0_120 = arith.constant 0 : index
    %194 = vector.load %arg19[%c0_117, %c1_118, %c0_119, %c0_120] : memref<1x2x32x32xbf16, #tpu.memory_space<vmem>>, vector<1x1x32x32xbf16>
    %195 = vector.shape_cast %194 : vector<1x1x32x32xbf16> to vector<32x32xbf16>
    %196 = arith.truncf %193 : vector<2x32xf32> to vector<2x32xbf16>
    %cst_121 = arith.constant dense<0.000000e+00> : vector<2x32xf32>
    %197 = tpu.matmul %196, %195, %cst_121 {dimension_numbers = #tpu.dot_dimension_numbers<[1], [0], [0], [1], [0, 0, 1, 1], [], []>} : vector<2x32xbf16>, vector<32x32xbf16>, vector<2x32xf32> -> vector<2x32xf32>
    %c0_122 = arith.constant 0 : index
    %c1_123 = arith.constant 1 : index
    %c0_124 = arith.constant 0 : index
    %c0_125 = arith.constant 0 : index
    %198 = vector.load %arg20[%c0_122, %c1_123, %c0_124, %c0_125] : memref<1x2x1x32xf32, #tpu.memory_space<vmem>>, vector<1x1x1x32xf32>
    %199 = vector.shape_cast %198 : vector<1x1x1x32xf32> to vector<1x32xf32>
    %200 = vector.broadcast %199 : vector<1x32xf32> to vector<2x32xf32>
    %201 = arith.addf %197, %200 : vector<2x32xf32>
    %202 = arith.addf %201, %183 : vector<2x32xf32>
    %c0_126 = arith.constant 0 : index
    %c1_127 = arith.constant 1 : index
    %c0_128 = arith.constant 0 : index
    %c0_129 = arith.constant 0 : index
    %203 = vector.load %arg21[%c0_126, %c1_127, %c0_128, %c0_129] : memref<1x2x1x32xf32, #tpu.memory_space<vmem>>, vector<1x1x1x32xf32>
    %204 = vector.shape_cast %203 : vector<1x1x1x32xf32> to vector<1x32xf32>
    %c0_130 = arith.constant 0 : index
    %c1_131 = arith.constant 1 : index
    %c0_132 = arith.constant 0 : index
    %c0_133 = arith.constant 0 : index
    %205 = vector.load %arg22[%c0_130, %c1_131, %c0_132, %c0_133] : memref<1x2x1x32xf32, #tpu.memory_space<vmem>>, vector<1x1x1x32xf32>
    %206 = vector.shape_cast %205 : vector<1x1x1x32xf32> to vector<1x32xf32>
    %cst_134 = arith.constant dense<0.000000e+00> : vector<2xf32>
    %207 = vector.multi_reduction <add>, %202, %cst_134 [1] : vector<2x32xf32> to vector<2xf32>
    %208 = vector.shape_cast %207 : vector<2xf32> to vector<2x1xf32>
    %cst_135 = arith.constant 3.200000e+01 : f32
    %209 = vector.broadcast %cst_135 : f32 to vector<2x1xf32>
    %210 = arith.divf %208, %209 : vector<2x1xf32>
    %211 = vector.broadcast %210 : vector<2x1xf32> to vector<2x32xf32>
    %212 = arith.subf %202, %211 : vector<2x32xf32>
    %213 = arith.mulf %212, %212 : vector<2x32xf32>
    %cst_136 = arith.constant dense<0.000000e+00> : vector<2xf32>
    %214 = vector.multi_reduction <add>, %213, %cst_136 [1] : vector<2x32xf32> to vector<2xf32>
    %215 = vector.shape_cast %214 : vector<2xf32> to vector<2x1xf32>
    %cst_137 = arith.constant 3.200000e+01 : f32
    %216 = vector.broadcast %cst_137 : f32 to vector<2x1xf32>
    %217 = arith.divf %215, %216 : vector<2x1xf32>
    %cst_138 = arith.constant 9.99999974E-6 : f32
    %218 = vector.broadcast %cst_138 : f32 to vector<2x1xf32>
    %219 = arith.addf %217, %218 : vector<2x1xf32>
    %220 = math.rsqrt %219 : vector<2x1xf32>
    %221 = vector.broadcast %220 : vector<2x1xf32> to vector<2x32xf32>
    %222 = arith.mulf %212, %221 : vector<2x32xf32>
    %223 = vector.broadcast %204 : vector<1x32xf32> to vector<2x32xf32>
    %224 = arith.mulf %222, %223 : vector<2x32xf32>
    %225 = vector.broadcast %206 : vector<1x32xf32> to vector<2x32xf32>
    %226 = arith.addf %224, %225 : vector<2x32xf32>
    %c0_139 = arith.constant 0 : index
    %c1_140 = arith.constant 1 : index
    %c0_141 = arith.constant 0 : index
    %c0_142 = arith.constant 0 : index
    %227 = vector.load %arg23[%c0_139, %c1_140, %c0_141, %c0_142] : memref<1x2x32x32xbf16, #tpu.memory_space<vmem>>, vector<1x1x32x32xbf16>
    %228 = vector.shape_cast %227 : vector<1x1x32x32xbf16> to vector<32x32xbf16>
    %229 = arith.truncf %226 : vector<2x32xf32> to vector<2x32xbf16>
    %cst_143 = arith.constant dense<0.000000e+00> : vector<2x32xf32>
    %230 = tpu.matmul %229, %228, %cst_143 {dimension_numbers = #tpu.dot_dimension_numbers<[1], [0], [0], [1], [0, 0, 1, 1], [], []>} : vector<2x32xbf16>, vector<32x32xbf16>, vector<2x32xf32> -> vector<2x32xf32>
    %231 = arith.addf %123, %230 : vector<2x32xf32>
    %232 = arith.addf %231, %4 : vector<2x32xf32>
    %c0_144 = arith.constant 0 : index
    %c0_145 = arith.constant 0 : index
    %c0_146 = arith.constant 0 : index
    %233 = vector.load %arg25[%c0_144, %c0_145, %c0_146] : memref<1x1x32xf32, #tpu.memory_space<vmem>>, vector<1x1x32xf32>
    %234 = vector.shape_cast %233 : vector<1x1x32xf32> to vector<1x32xf32>
    %c0_147 = arith.constant 0 : index
    %c0_148 = arith.constant 0 : index
    %c0_149 = arith.constant 0 : index
    %235 = vector.load %arg26[%c0_147, %c0_148, %c0_149] : memref<1x1x32xf32, #tpu.memory_space<vmem>>, vector<1x1x32xf32>
    %236 = vector.shape_cast %235 : vector<1x1x32xf32> to vector<1x32xf32>
    %cst_150 = arith.constant dense<0.000000e+00> : vector<2xf32>
    %237 = vector.multi_reduction <add>, %232, %cst_150 [1] : vector<2x32xf32> to vector<2xf32>
    %238 = vector.shape_cast %237 : vector<2xf32> to vector<2x1xf32>
    %cst_151 = arith.constant 3.200000e+01 : f32
    %239 = vector.broadcast %cst_151 : f32 to vector<2x1xf32>
    %240 = arith.divf %238, %239 : vector<2x1xf32>
    %241 = vector.broadcast %240 : vector<2x1xf32> to vector<2x32xf32>
    %242 = arith.subf %232, %241 : vector<2x32xf32>
    %243 = arith.mulf %242, %242 : vector<2x32xf32>
    %cst_152 = arith.constant dense<0.000000e+00> : vector<2xf32>
    %244 = vector.multi_reduction <add>, %243, %cst_152 [1] : vector<2x32xf32> to vector<2xf32>
    %245 = vector.shape_cast %244 : vector<2xf32> to vector<2x1xf32>
    %cst_153 = arith.constant 3.200000e+01 : f32
    %246 = vector.broadcast %cst_153 : f32 to vector<2x1xf32>
    %247 = arith.divf %245, %246 : vector<2x1xf32>
    %cst_154 = arith.constant 9.99999974E-6 : f32
    %248 = vector.broadcast %cst_154 : f32 to vector<2x1xf32>
    %249 = arith.addf %247, %248 : vector<2x1xf32>
    %250 = math.rsqrt %249 : vector<2x1xf32>
    %251 = vector.broadcast %250 : vector<2x1xf32> to vector<2x32xf32>
    %252 = arith.mulf %242, %251 : vector<2x32xf32>
    %253 = vector.broadcast %234 : vector<1x32xf32> to vector<2x32xf32>
    %254 = arith.mulf %252, %253 : vector<2x32xf32>
    %255 = vector.broadcast %236 : vector<1x32xf32> to vector<2x32xf32>
    %256 = arith.addf %254, %255 : vector<2x32xf32>
    %c0_155 = arith.constant 0 : index
    %c0_156 = arith.constant 0 : index
    %257 = vector.load %arg28[%c0_155, %c0_156] : memref<2x32xf32, #tpu.memory_space<vmem>>, vector<2x32xf32>
    tpu.vector_store %arg28[%c0_155, %c0_156], %256 {strides = array<i32>} : memref<2x32xf32, #tpu.memory_space<vmem>>, vector<2x32xf32>,
    %c0_157 = arith.constant 0 : index
    %c0_158 = arith.constant 0 : index
    %258 = vector.load %arg27[%c0_157, %c0_158] : memref<2x32xf32, #tpu.memory_space<vmem>>, vector<2x32xf32>
    tpu.vector_store %arg27[%c0_157, %c0_158], %256 {strides = array<i32>} : memref<2x32xf32, #tpu.memory_space<vmem>>, vector<2x32xf32>,
    return
  }
  func.func @transform_0(%arg0: i32) -> (i32, i32) {
    %c0_i32 = arith.constant 0 : i32
    %c0_i32_0 = arith.constant 0 : i32
    %c0_i32_1 = arith.constant 0 : i32
    return %c0_i32, %c0_i32_0 : i32, i32
  }
  func.func @transform_1(%arg0: i32) -> (i32, i32) {
    %c0_i32 = arith.constant 0 : i32
    %c0_i32_0 = arith.constant 0 : i32
    %c0_i32_1 = arith.constant 0 : i32
    return %c0_i32, %c0_i32_0 : i32, i32
  }
  func.func @transform_2(%arg0: i32) -> (i32, i32) {
    %c0_i32 = arith.constant 0 : i32
    %c0_i32_0 = arith.constant 0 : i32
    %c0_i32_1 = arith.constant 0 : i32
    return %c0_i32, %c0_i32_0 : i32, i32
  }
  func.func @transform_3(%arg0: i32) -> (i32, i32) {
    %c0_i32 = arith.constant 0 : i32
    %c0_i32_0 = arith.constant 0 : i32
    %c0_i32_1 = arith.constant 0 : i32
    return %c0_i32, %c0_i32_0 : i32, i32
  }
  func.func @transform_4(%arg0: i32) -> (i32, i32) {
    %c0_i32 = arith.constant 0 : i32
    %c0_i32_0 = arith.constant 0 : i32
    %c0_i32_1 = arith.constant 0 : i32
    return %c0_i32, %c0_i32_0 : i32, i32
  }
  func.func @transform_5(%arg0: i32) -> (i32, i32) {
    %c0_i32 = arith.constant 0 : i32
    %c0_i32_0 = arith.constant 0 : i32
    %c0_i32_1 = arith.constant 0 : i32
    return %c0_i32, %c0_i32_0 : i32, i32
  }
  func.func @transform_6(%arg0: i32) -> (i32, i32) {
    %c0_i32 = arith.constant 0 : i32
    %c0_i32_0 = arith.constant 0 : i32
    %c0_i32_1 = arith.constant 0 : i32
    return %c0_i32, %c0_i32_0 : i32, i32
  }
  func.func @transform_7(%arg0: i32) -> (i32, i32) {
    %c0_i32 = arith.constant 0 : i32
    %c0_i32_0 = arith.constant 0 : i32
    %c0_i32_1 = arith.constant 0 : i32
    return %c0_i32, %c0_i32_0 : i32, i32
  }
  func.func @transform_8(%arg0: i32) -> (i32, i32) {
    %c0_i32 = arith.constant 0 : i32
    %c0_i32_0 = arith.constant 0 : i32
    %c0_i32_1 = arith.constant 0 : i32
    return %c0_i32, %c0_i32_0 : i32, i32
  }
  func.func @transform_9(%arg0: i32) -> (i32, i32) {
    %c0_i32 = arith.constant 0 : i32
    %c0_i32_0 = arith.constant 0 : i32
    %c0_i32_1 = arith.constant 0 : i32
    return %c0_i32, %c0_i32_0 : i32, i32
  }
  func.func @transform_10(%arg0: i32) -> (i32, i32, i32) {
    %c0_i32 = arith.constant 0 : i32
    %c0_i32_0 = arith.constant 0 : i32
    %c0_i32_1 = arith.constant 0 : i32
    return %arg0, %c0_i32, %c0_i32_0 : i32, i32, i32
  }
  func.func @transform_11(%arg0: i32) -> (i32, i32, i32) {
    %c0_i32 = arith.constant 0 : i32
    %c0_i32_0 = arith.constant 0 : i32
    %c0_i32_1 = arith.constant 0 : i32
    return %arg0, %c0_i32, %c0_i32_0 : i32, i32, i32
  }
  func.func @transform_12(%arg0: i32) -> (i32, i32, i32, i32) {
    %c0_i32 = arith.constant 0 : i32
    %c0_i32_0 = arith.constant 0 : i32
    %c0_i32_1 = arith.constant 0 : i32
    %c0_i32_2 = arith.constant 0 : i32
    return %arg0, %c0_i32, %c0_i32_0, %c0_i32_1 : i32, i32, i32, i32
  }
  func.func @transform_13(%arg0: i32) -> (i32, i32, i32, i32) {
    %c0_i32 = arith.constant 0 : i32
    %c0_i32_0 = arith.constant 0 : i32
    %c0_i32_1 = arith.constant 0 : i32
    %c0_i32_2 = arith.constant 0 : i32
    return %arg0, %c0_i32, %c0_i32_0, %c0_i32_1 : i32, i32, i32, i32
  }
  func.func @transform_14(%arg0: i32) -> (i32, i32, i32, i32) {
    %c0_i32 = arith.constant 0 : i32
    %c0_i32_0 = arith.constant 0 : i32
    %c0_i32_1 = arith.constant 0 : i32
    %c0_i32_2 = arith.constant 0 : i32
    return %arg0, %c0_i32, %c0_i32_0, %c0_i32_1 : i32, i32, i32, i32
  }
  func.func @transform_15(%arg0: i32) -> (i32, i32, i32, i32) {
    %c0_i32 = arith.constant 0 : i32
    %c0_i32_0 = arith.constant 0 : i32
    %c0_i32_1 = arith.constant 0 : i32
    %c0_i32_2 = arith.constant 0 : i32
    return %arg0, %c0_i32, %c0_i32_0, %c0_i32_1 : i32, i32, i32, i32
  }
  func.func @transform_16(%arg0: i32) -> (i32, i32, i32, i32) {
    %c0_i32 = arith.constant 0 : i32
    %c0_i32_0 = arith.constant 0 : i32
    %c0_i32_1 = arith.constant 0 : i32
    %c0_i32_2 = arith.constant 0 : i32
    return %arg0, %c0_i32, %c0_i32_0, %c0_i32_1 : i32, i32, i32, i32
  }
  func.func @transform_17(%arg0: i32) -> (i32, i32, i32, i32) {
    %c0_i32 = arith.constant 0 : i32
    %c0_i32_0 = arith.constant 0 : i32
    %c0_i32_1 = arith.constant 0 : i32
    %c0_i32_2 = arith.constant 0 : i32
    return %arg0, %c0_i32, %c0_i32_0, %c0_i32_1 : i32, i32, i32, i32
  }
  func.func @transform_18(%arg0: i32) -> (i32, i32, i32, i32) {
    %c0_i32 = arith.constant 0 : i32
    %c0_i32_0 = arith.constant 0 : i32
    %c0_i32_1 = arith.constant 0 : i32
    %c0_i32_2 = arith.constant 0 : i32
    return %arg0, %c0_i32, %c0_i32_0, %c0_i32_1 : i32, i32, i32, i32
  }
  func.func @transform_19(%arg0: i32) -> (i32, i32, i32, i32) {
    %c0_i32 = arith.constant 0 : i32
    %c0_i32_0 = arith.constant 0 : i32
    %c0_i32_1 = arith.constant 0 : i32
    %c0_i32_2 = arith.constant 0 : i32
    return %arg0, %c0_i32, %c0_i32_0, %c0_i32_1 : i32, i32, i32, i32
  }
  func.func @transform_20(%arg0: i32) -> (i32, i32, i32, i32) {
    %c0_i32 = arith.constant 0 : i32
    %c0_i32_0 = arith.constant 0 : i32
    %c0_i32_1 = arith.constant 0 : i32
    %c0_i32_2 = arith.constant 0 : i32
    return %arg0, %c0_i32, %c0_i32_0, %c0_i32_1 : i32, i32, i32, i32
  }
  func.func @transform_21(%arg0: i32) -> (i32, i32, i32, i32) {
    %c0_i32 = arith.constant 0 : i32
    %c0_i32_0 = arith.constant 0 : i32
    %c0_i32_1 = arith.constant 0 : i32
    %c0_i32_2 = arith.constant 0 : i32
    return %arg0, %c0_i32, %c0_i32_0, %c0_i32_1 : i32, i32, i32, i32
  }
  func.func @transform_22(%arg0: i32) -> (i32, i32, i32, i32) {
    %c0_i32 = arith.constant 0 : i32
    %c0_i32_0 = arith.constant 0 : i32
    %c0_i32_1 = arith.constant 0 : i32
    %c0_i32_2 = arith.constant 0 : i32
    return %arg0, %c0_i32, %c0_i32_0, %c0_i32_1 : i32, i32, i32, i32
  }
  func.func @transform_23(%arg0: i32) -> (i32, i32, i32) {
    %c0_i32 = arith.constant 0 : i32
    %c0_i32_0 = arith.constant 0 : i32
    %c0_i32_1 = arith.constant 0 : i32
    return %arg0, %c0_i32, %c0_i32_0 : i32, i32, i32
  }
  func.func @transform_24(%arg0: i32) -> (i32, i32, i32) {
    %c0_i32 = arith.constant 0 : i32
    %c0_i32_0 = arith.constant 0 : i32
    %c0_i32_1 = arith.constant 0 : i32
    return %arg0, %c0_i32, %c0_i32_0 : i32, i32, i32
  }
  func.func @transform_25(%arg0: i32) -> (i32, i32, i32) {
    %c0_i32 = arith.constant 0 : i32
    %c0_i32_0 = arith.constant 0 : i32
    %c0_i32_1 = arith.constant 0 : i32
    return %arg0, %c0_i32, %c0_i32_0 : i32, i32, i32
  }
  func.func @transform_26(%arg0: i32) -> (i32, i32) {
    %c0_i32 = arith.constant 0 : i32
    %c0_i32_0 = arith.constant 0 : i32
    %c0_i32_1 = arith.constant 0 : i32
    return %c0_i32, %c0_i32_0 : i32, i32
  }
}

</mosaic_0001>

<bundles_post_ra>
// kernel: tpu_custom_call.1
= control target key start
LH: loop header
LB: loop body
LE: loop exit
PB: predicated region body
PF: predicated region fallthrough
CT: control target
= control target key end

     0   :  { %s4262_s0 = inlined_call_operand.hbm [shape: bf16[2,11], index: 0, kind: input, shape index: {}]   ;;  %s4263_s1 = inlined_call_operand.vmem [shape: bf16[6,3], index: 1, kind: input, shape index: {}]   ;;  %s4264_s2 = inlined_call_operand.vmem [shape: bf16[10,6], index: 2, kind: input, shape index: {}]   ;;  %s4265_s3 = inlined_call_operand.hbm [shape: f32[2,32], index: 3, kind: input, shape index: {}]   ;;  %s4266_s4 = inlined_call_operand.vmem [shape: bf16[11,32], index: 4, kind: input, shape index: {}]   ;;  %s4267_s5 = inlined_call_operand.hbm [shape: f32[1,32], index: 5, kind: input, shape index: {}]   ;;  %s4268_s6 = inlined_call_operand.hbm [shape: bf16[3,32], index: 6, kind: input, shape index: {}]   ;;  %s4269_s7 = inlined_call_operand.vmem [shape: bf16[6,32], index: 7, kind: input, shape index: {}]   ;;  %s4270_s8 = inlined_call_operand.hbm [shape: f32[1,32], index: 8, kind: input, shape index: {}]   ;;  %s4271_s9 = inlined_call_operand.hbm [shape: f32[1,32], index: 9, kind: input, shape index: {}]   ;;  %s4272_s10 = inlined_call_operand.hbm [shape: bf16[2,32,64], index: 10, kind: input, shape index: {}]   ;;  %s4273_s11 = inlined_call_operand.hbm [shape: f32[2,1,64], index: 11, kind: input, shape index: {}]   ;;  %s4274_s12 = inlined_call_operand.hbm [shape: bf16[2,2,32,64], index: 12, kind: input, shape index: {}]   ;;  %s4275_s13 = inlined_call_operand.vmem [shape: f32[2,2,1,64], index: 13, kind: input, shape index: {}]   ;;  %s4276_s14 = inlined_call_operand.vmem [shape: f32[2,2,1,32], index: 14, kind: input, shape index: {}]   ;;  %s4277_s15 = inlined_call_operand.vmem [shape: f32[2,2,1,32], index: 15, kind: input, shape index: {}]   ;;  %s4278_s16 = inlined_call_operand.hbm [shape: bf16[2,2,32,32], index: 16, kind: input, shape index: {}]   ;;  %s4279_s17 = inlined_call_operand.vmem [shape: f32[2,2,1,32], index: 17, kind: input, shape index: {}]   ;;  %s4280_s18 = inlined_call_operand.hbm [shape: bf16[2,2,32,32], index: 18, kind: input, shape index: {}]   ;;  %s4281_s19 = inlined_call_operand.vmem [shape: f32[2,2,1,32], index: 19, kind: input, shape index: {}]   ;;  %s4282_s20 = inlined_call_operand.vmem [shape: f32[2,2,1,32], index: 20, kind: input, shape index: {}]   ;;  %s4283_s21 = inlined_call_operand.hbm [shape: f32[2,2,1,32], index: 21, kind: input, shape index: {}]   ;;  %s4284_s22 = inlined_call_operand.hbm [shape: bf16[2,2,32,32], index: 22, kind: input, shape index: {}]   ;;  %s4285_s23 = inlined_call_operand.vmem [shape: f32[2,1,32], index: 23, kind: input, shape index: {}]   ;;  %s4286_s24 = inlined_call_operand.vmem [shape: f32[2,1,32], index: 24, kind: input, shape index: {}]   ;;  %s4287_s25 = inlined_call_operand.vmem [shape: f32[2,1,32], index: 25, kind: input, shape index: {}]   ;;  %s4288_s26 = inlined_call_operand.hbm [shape: f32[2,32], index: 26, kind: output, shape index: {}]  }
   0x1   :  { %4300 = sst [smem:[#allocation33_spill]] %s4262_s0 }
   0x2   :  { %4301 = sst [smem:[#allocation34_spill]] %s4263_s1 }
   0x3   :  { %4302 = sst [smem:[#allocation35_spill]] %s4264_s2 }
   0x4   :  { %4303 = sst [smem:[#allocation36_spill]] %s4265_s3 }
   0x5   :  { %4304 = sst [smem:[#allocation37_spill]] %s4266_s4 }
   0x6   :  { %4305 = sst [smem:[#allocation38_spill]] %s4267_s5 }
   0x7   :  { %4306 = sst [smem:[#allocation39_spill]] %s4268_s6 }
   0x8   :  { %4307 = sst [smem:[#allocation40_spill]] %s4269_s7 }
   0x9   :  { %4308 = sst [smem:[#allocation41_spill]] %s4270_s8 }
   0xa   :  { %4309 = sst [smem:[#allocation42_spill]] %s4271_s9 }
   0xb   :  { %4310 = sst [smem:[#allocation43_spill]] %s4272_s10 }
   0xc   :  { %4311 = sst [smem:[#allocation44_spill]] %s4273_s11 }
   0xd   :  { %4312 = sst [smem:[#allocation45_spill]] %s4274_s12 }
   0xe   :  { %4313 = sst [smem:[#allocation46_spill]] %s4275_s13 }
   0xf   :  { %4314 = sst [smem:[#allocation47_spill]] %s4276_s14 }
  0x10   :  { %4315 = sst [smem:[#allocation48_spill]] %s4277_s15 }
  0x11   :  { %4316 = sst [smem:[#allocation49_spill]] %s4278_s16 }
  0x12   :  { %4317 = sst [smem:[#allocation50_spill]] %s4279_s17 }
  0x13   :  { %4318 = sst [smem:[#allocation51_spill]] %s4280_s18 }
  0x14   :  { %4319 = sst [smem:[#allocation52_spill]] %s4281_s19 }
  0x15   :  { %4320 = sst [smem:[#allocation53_spill]] %s4282_s20 }
  0x16   :  { %4321 = sst [smem:[#allocation54_spill]] %s4283_s21 }
  0x17   :  { %4322 = sst [smem:[#allocation55_spill]] %s4284_s22 }
  0x18   :  { %4323 = sst [smem:[#allocation56_spill]] %s4285_s23 }
  0x19   :  { %4324 = sst [smem:[#allocation57_spill]] %s4286_s24 }
  0x1a   :  { %4325 = sst [smem:[#allocation58_spill]] %s4287_s25 }
  0x1b   :  { %4326 = sst [smem:[#allocation59_spill]] %s4288_s26 }
  0x1c   :  { %31 = vsyncpa [#allocation6], 0 }
  0x1d   :  { %32 = vsyncpa [#allocation9], 0 }
  0x1e   :  { %33 = vsyncpa [#allocation12], 0 }
  0x1f   :  { %34 = vsyncpa [#allocation15], 0 }
  0x20   :  { %35 = vsyncpa [#allocation7], 0  ;;  %s3727_s27 = smov 0   ;;  %s3729_s3 = smov 0  }
  0x21   :  { %s3731_s7 = smov 0   ;;  %s3733_s28 = smov 0  }
  0x22 LB: > { %4327 = sst [smem:[#allocation30_spill]] %s3570_s7  ;;  %s3749_s9 = sadd.s32 4294967295, %s3574_s28   ;;  %s3574_s28 = sphi %s3733_s28, %s4370_s28   ;;  %s3570_s7 = sphi %s3731_s7, %s4372_s7   ;;  %s3566_s3 = sphi %s3729_s3, %s4374_s3   ;;  %s3562_s27 = sphi %s3727_s27, %s4373_s27  }
  0x23   : > { %s4328_s29 = sld [smem:[#allocation33_spill]]  ;;  %p2704_p0 = scmp.ge.s32.totalorder %s3574_s28, 1 }
  0x24   : > { %p272_p1 = scmp.eq.s32.totalorder %s3749_s9, 0  ;;  %p693_p2 = scmp.lt.s32.totalorder %s3574_s28, 3 }
  0x25   : > { %p2705_p3 = scmp.ne.s32.totalorder %s3749_s9, 0  ;;  %s3576_s2 = smov [#allocation5]  }
  0x26   : > { %p3755_p4 = pnand %p2704_p0, %p693_p2  ;;  %s707_s5 = sshll.u32 %s3576_s2, 4  ;;  %s708_s5 = int_to_ptr.vmem [resolvable:$true] %s707_s5 }
  0x27   : > { %s3768_s6 = sadd.s32 1, %s3574_s28   ;;  %s258_s8 = sadd.s32 1, %s3570_s7 }
  0x28   : > { %p2948_p5 = pneg %p3755_p4  ;;  %4331 = sst [smem:[#allocation31_spill]] %s3768_s6 }
  0x29   : > { %s705_s0 = sshll.u32 %s4328_s29, 4  ;;  %s255_s1 = ssub.s32 %s3574_s28, %s3768_s6  ;;  %s706_s0 = int_to_ptr.hbm [resolvable:$true] %s705_s0 }
  0x2a   : > { %p3763_p6 = pnand %p2948_p5, %p272_p1  ;;  %p256_p7 = scmp.eq.s32.totalorder %s255_s1, 0 }
  0x2b   : > { %p265_p8 = scmp.ne.s32.totalorder %s3570_s7, %s3566_s3  ;;  %p266_p9 = scmp.eq.s32.totalorder %s3574_s28, 0 }
  0x2c   : > { %2951 = dma.hbm_to_vmem [thread:$0]  (!%p3763_p6), %s706_s0, 16, %s708_s5, [#allocation6]  }
  0x2d   : > { %p271_p10 = scmp.ne.s32.totalorder %s3566_s3, %s3562_s27  ;;  %p3782_p11 = por %p266_p9, %p265_p8 }
  0x2e   : > { %s3780_s4 = scalar_select %p256_p7, %s3570_s7, %s258_s8  }
  0x2f   : > { %p3788_p12 = por %p272_p1, %p271_p10  ;;  %p2995_p13 = scmp.lt.s32.totalorder %s3574_s28, 2 }
  0x30   : > { %4332 = sst [smem:[#allocation32_spill]] %s3780_s4  ;;  %s790_s0 = sand.u32 1, %s3574_s28  }
  0x31   : > { %s3795_s5 = sand.u32 1, %s3570_s7   ;;  %s2880_s27 = sshll.u32 %s3574_s28, 4 }
  0x32   : > { %s2712_s1 = sshll.u32 %s3795_s5, 4  ;;  %s4335_s4 = sld [smem:[#allocation43_spill]] }
  0x33   : > { %s794_s24 = scalar_lea.vmem [#allocation16], %s2712_s1  ;;  %p3804_p0 = pnand %p2995_p13, %p3782_p11 }
  0x34   : > { %s802_s20 = sshll.u32 %s794_s24, 4  ;;  %s4337_s11 = sld [smem:[#allocation44_spill]]  ;;  %s803_s20 = int_to_ptr.vmem [resolvable:$true] %s802_s20 }
  0x35   : > { %s3812_s14 = scalar_lea.sflag [#allocation6], %s790_s0  ;;  %p3816_p5 = pneg %p3804_p0 }
  0x38   : > { %s799_s26 = scalar_lea.hbm %s4335_s4, %s2880_s27  ;;  %s3139_s17 = scalar_lea.hbm %s4335_s4, 32 }
  0x39   : > { %s800_s25 = sshll.u32 %s799_s26, 4  ;;  %s801_s25 = int_to_ptr.hbm [resolvable:$true] %s800_s25 }
  0x3a   : > { %s818_s15 = scalar_lea.hbm %s4337_s11, %s3574_s28  ;;  %s3132_s13 = sshra.s32 %s801_s25, 4  ;;  %s3133_s13 = int_to_ptr.hbm [resolvable:$true] %s3132_s13 }
  0x3b   : > { %s3134_s6 = scalar_lea.hbm %s3133_s13, 16  ;;  %p3140_p9 = scmp.lt.s32.totalorder %s3133_s13, %s4335_s4 }
  0x3c   : > { %p3135_p2 = scmp.ne.s32.totalorder %s3133_s13, %s3134_s6  ;;  %p3141_p10 = scmp.lt.s32.totalorder %s3139_s17, %s3134_s6 }
  0x3e   : > { %p3137_p7 = pnand %p3816_p5, %p3135_p2  ;;  %p3142_p11 = por %p3141_p10, %p3140_p9 }
  0x40   : > { %p3138_p8 = pneg %p3137_p7 }
  0x42   : > { %p3143_p13 = pnand %p3142_p11, %p3138_p8 }
  0x44   : > { %3146 = shalt.err (!%p3143_p13)
}
  0x45   : > { %s4296_s1 = smov 64   ;;  %s4298_s27 = smov 4  }
  0x46   : > { %2970 = dma.hbm_to_vmem [thread:$0]  (!%p3804_p0), %s801_s25, 256, %s803_s20, %s3812_s14, %s4296_s1, %s4296_s1, %s4298_s27  }
  0x47   : > { %s820_s8 = sshll.u32 %s818_s15, 4  ;;  %s815_s26 = scalar_lea.vmem [#allocation17], %s3795_s5  ;;  %s821_s8 = int_to_ptr.hbm [resolvable:$true] %s820_s8 }
  0x48   : > { %s822_s29 = sshll.u32 %s815_s26, 4  ;;  %s3162_s13 = sshra.s32 %s821_s8, 4  ;;  %s823_s29 = int_to_ptr.vmem [resolvable:$true] %s822_s29  ;;  %s3163_s13 = int_to_ptr.hbm [resolvable:$true] %s3162_s13 }
  0x49   : > { %s3164_s6 = scalar_lea.hbm %s3163_s13, 1  ;;  %s3169_s0 = scalar_lea.hbm %s4337_s11, 2 }
  0x4a   : > { %p3165_p2 = scmp.ne.s32.totalorder %s3163_s13, %s3164_s6  ;;  %p3170_p9 = scmp.lt.s32.totalorder %s3163_s13, %s4337_s11 }
  0x4b   : > { %p3171_p10 = scmp.lt.s32.totalorder %s3169_s0, %s3164_s6 }
  0x4c   : > { %p3167_p7 = pnand %p3165_p2, %p3816_p5 }
  0x4d   : > { %p3172_p11 = por %p3171_p10, %p3170_p9 }
  0x4e   : > { %p3168_p8 = pneg %p3167_p7 }
  0x50   : > { %p3173_p13 = pnand %p3172_p11, %p3168_p8 }
  0x52   : > { %3176 = shalt.err (!%p3173_p13)
}
  0x53   : > { %2973 = dma.hbm_to_vmem [thread:$0]  (!%p3804_p0), %s821_s8, 16, %s823_s29, %s3812_s14  }
  0x54   : > { %s3847_s15 = sshll.u32 %s3795_s5, 5  ;;  %s3850_s20 = sshll.u32 %s3574_s28, 5 }
  0x55   : > { %s4339_s12 = sld [smem:[#allocation45_spill]]  ;;  %s833_s13 = scalar_lea.vmem [#allocation18], %s3847_s15 }
  0x56   : > { %s841_s6 = sshll.u32 %s833_s13, 4  ;;  %s842_s6 = int_to_ptr.vmem [resolvable:$true] %s841_s6 }
  0x5b   : > { %s838_s4 = scalar_lea.hbm %s4339_s12, %s3850_s20  ;;  %s3199_s0 = scalar_lea.hbm %s4339_s12, 64 }
  0x5c   : > { %s839_s26 = sshll.u32 %s838_s4, 4  ;;  %s840_s26 = int_to_ptr.hbm [resolvable:$true] %s839_s26 }
  0x5d   : > { %s3192_s17 = sshra.s32 %s840_s26, 4  ;;  %s3193_s17 = int_to_ptr.hbm [resolvable:$true] %s3192_s17 }
  0x5e   : > { %s3194_s7 = scalar_lea.hbm %s3193_s17, 32  ;;  %p3200_p9 = scmp.lt.s32.totalorder %s3193_s17, %s4339_s12 }
  0x5f   : > { %p3195_p2 = scmp.ne.s32.totalorder %s3193_s17, %s3194_s7  ;;  %p3201_p10 = scmp.lt.s32.totalorder %s3199_s0, %s3194_s7 }
  0x61   : > { %p3197_p7 = pnand %p3195_p2, %p3816_p5  ;;  %p3202_p11 = por %p3201_p10, %p3200_p9 }
  0x63   : > { %p3198_p8 = pneg %p3197_p7 }
  0x65   : > { %p3203_p13 = pnand %p3202_p11, %p3198_p8 }
  0x67   : > { %3206 = shalt.err (!%p3203_p13)
}
  0x68   : > { %s4340_s25 = smov 4   ;;  %s4341_s23 = smov 64  }
  0x69   : > { %2976 = dma.hbm_to_vmem [thread:$0]  (!%p3804_p0), %s840_s26, 512, %s842_s6, %s3812_s14, %s4341_s23, %s4341_s23, %s4340_s25  }
  0x6a   : > { %s4342_s16 = sld [smem:[#allocation49_spill]]  ;;  %s876_s27 = scalar_lea.vmem [#allocation19], %s3847_s15 }
  0x6b   : > { %s884_s17 = sshll.u32 %s876_s27, 4  ;;  %s885_s17 = int_to_ptr.vmem [resolvable:$true] %s884_s17 }
  0x70   : > { %s881_s8 = scalar_lea.hbm %s4342_s16, %s3850_s20  ;;  %s3229_s26 = scalar_lea.hbm %s4342_s16, 64 }
  0x71   : > { %s882_s1 = sshll.u32 %s881_s8, 4  ;;  %s883_s1 = int_to_ptr.hbm [resolvable:$true] %s882_s1 }
  0x72   : > { %s3222_s7 = sshra.s32 %s883_s1, 4  ;;  %s3223_s7 = int_to_ptr.hbm [resolvable:$true] %s3222_s7 }
  0x73   : > { %s3224_s29 = scalar_lea.hbm %s3223_s7, 32  ;;  %p3230_p9 = scmp.lt.s32.totalorder %s3223_s7, %s4342_s16 }
  0x74   : > { %p3225_p2 = scmp.ne.s32.totalorder %s3223_s7, %s3224_s29  ;;  %p3231_p10 = scmp.lt.s32.totalorder %s3229_s26, %s3224_s29 }
  0x76   : > { %p3227_p7 = pnand %p3225_p2, %p3816_p5  ;;  %p3232_p11 = por %p3231_p10, %p3230_p9 }
  0x78   : > { %p3228_p8 = pneg %p3227_p7 }
  0x7a   : > { %p3233_p13 = pnand %p3232_p11, %p3228_p8 }
  0x7c   : > { %3236 = shalt.err (!%p3233_p13)
}
  0x7d   : > { %2979 = dma.hbm_to_vmem [thread:$0]  (!%p3804_p0), %s883_s1, 512, %s885_s17, %s3812_s14, %s4341_s23, %s4341_s23, %s4340_s25  }
  0x7e   : > { %s4343_s18 = sld [smem:[#allocation51_spill]]  ;;  %s905_s8 = scalar_lea.vmem [#allocation20], %s3847_s15 }
  0x7f   : > { %s913_s27 = sshll.u32 %s905_s8, 4  ;;  %s914_s27 = int_to_ptr.vmem [resolvable:$true] %s913_s27 }
  0x84   : > { %s910_s13 = scalar_lea.hbm %s4343_s18, %s3850_s20  ;;  %s3259_s1 = scalar_lea.hbm %s4343_s18, 64 }
  0x85   : > { %s911_s12 = sshll.u32 %s910_s13, 4  ;;  %s912_s12 = int_to_ptr.hbm [resolvable:$true] %s911_s12 }
  0x86   : > { %s3252_s7 = sshra.s32 %s912_s12, 4  ;;  %s3253_s7 = int_to_ptr.hbm [resolvable:$true] %s3252_s7 }
  0x87   : > { %s3254_s29 = scalar_lea.hbm %s3253_s7, 32  ;;  %p3260_p9 = scmp.lt.s32.totalorder %s3253_s7, %s4343_s18 }
  0x88   : > { %p3255_p2 = scmp.ne.s32.totalorder %s3253_s7, %s3254_s29  ;;  %p3261_p10 = scmp.lt.s32.totalorder %s3259_s1, %s3254_s29 }
  0x8a   : > { %p3257_p7 = pnand %p3255_p2, %p3816_p5  ;;  %p3262_p11 = por %p3261_p10, %p3260_p9 }
  0x8c   : > { %p3258_p8 = pneg %p3257_p7 }
  0x8e   : > { %p3263_p13 = pnand %p3262_p11, %p3258_p8 }
  0x90   : > { %3266 = shalt.err (!%p3263_p13)
}
  0x91   : > { %2982 = dma.hbm_to_vmem [thread:$0]  (!%p3804_p0), %s912_s12, 512, %s914_s27, %s3812_s14, %s4341_s23, %s4341_s23, %s4340_s25  }
  0x92   : > { %s4344_s13 = sld [smem:[#allocation36_spill]]  ;;  %s3579_s7 = smov [#allocation8]  }
  0x93   : > { %s725_s29 = sshll.u32 %s3579_s7, 4  ;;  %s4345_s1 = sld [smem:[#allocation39_spill]]  ;;  %s726_s29 = int_to_ptr.vmem [resolvable:$true] %s725_s29 }
  0x94   : > { %s3580_s6 = smov [#allocation11]   ;;  %s2724_s18 = sshll.u32 %s3795_s5, 1 }
  0x95   : > { %s752_s16 = sshll.u32 %s3580_s6, 4  ;;  %s2725_s12 = sshll.u32 %s3574_s28, 1  ;;  %s753_s16 = int_to_ptr.vmem [resolvable:$true] %s752_s16 }
  0x96   : > { %s941_s27 = scalar_lea.vmem [#allocation21], %s2724_s18  ;;  %s4346_s21 = sld [smem:[#allocation54_spill]] }
  0x97   : > { %s948_s11 = sshll.u32 %s941_s27, 4  ;;  %s949_s11 = int_to_ptr.vmem [resolvable:$true] %s948_s11 }
  0x98   : > { %s723_s8 = sshll.u32 %s4344_s13, 4  ;;  %s724_s8 = int_to_ptr.hbm [resolvable:$true] %s723_s8 }
  0x99   : > { %s750_s17 = sshll.u32 %s4345_s1, 4  ;;  %s751_s17 = int_to_ptr.hbm [resolvable:$true] %s750_s17 }
  0x9a   : > { %2954 = dma.hbm_to_vmem [thread:$0]  (!%p3763_p6), %s724_s8, 32, %s726_s29, [#allocation9]  }
  0x9b   : > { %2960 = dma.hbm_to_vmem [thread:$0]  (!%p3763_p6), %s751_s17, 32, %s753_s16, [#allocation12]  }
  0x9c   : > { %s945_s7 = scalar_lea.hbm %s4346_s21, %s2725_s12  ;;  %s3349_s16 = scalar_lea.hbm %s4346_s21, 4 }
  0x9d   : > { %s946_s0 = sshll.u32 %s945_s7, 4  ;;  %s947_s0 = int_to_ptr.hbm [resolvable:$true] %s946_s0 }
  0x9e   : > { %s3342_s26 = sshra.s32 %s947_s0, 4  ;;  %s3343_s26 = int_to_ptr.hbm [resolvable:$true] %s3342_s26 }
  0x9f   : > { %s3344_s8 = scalar_lea.hbm %s3343_s26, 2  ;;  %p3350_p9 = scmp.lt.s32.totalorder %s3343_s26, %s4346_s21 }
  0xa0   : > { %p3345_p2 = scmp.ne.s32.totalorder %s3343_s26, %s3344_s8  ;;  %p3351_p10 = scmp.lt.s32.totalorder %s3349_s16, %s3344_s8 }
  0xa2   : > { %p3347_p7 = pnand %p3345_p2, %p3816_p5  ;;  %p3352_p11 = por %p3351_p10, %p3350_p9 }
  0xa4   : > { %p3348_p8 = pneg %p3347_p7 }
  0xa6   : > { %p3353_p13 = pnand %p3352_p11, %p3348_p8 }
  0xa8   : > { %3356 = shalt.err (!%p3353_p13)
}
  0xa9   : > { %s3581_s1 = smov 16   ;;  %s3582_s17 = smov 1  }
  0xaa   : > { %2985 = dma.hbm_to_vmem [thread:$0]  (!%p3804_p0), %s947_s0, 32, %s949_s11, %s3812_s14, %s3581_s1, %s3581_s1, %s3582_s17  }
  0xab   : > { %s4347_s27 = sld [smem:[#allocation38_spill]]  ;;  %s3583_s13 = smov [#allocation10]  }
  0xac   : > { %s740_s7 = sshll.u32 %s3583_s13, 4  ;;  %s4348_s5 = sld [smem:[#allocation41_spill]]  ;;  %s741_s7 = int_to_ptr.vmem [resolvable:$true] %s740_s7 }
  0xad   : > { %s3584_s16 = smov [#allocation13]   ;;  %s4349_s28 = sld [smem:[#allocation42_spill]] }
  0xae   : > { %s767_s11 = sshll.u32 %s3584_s16, 4  ;;  %s3585_s17 = smov [#allocation14]   ;;  %s768_s11 = int_to_ptr.vmem [resolvable:$true] %s767_s11 }
  0xaf   : > { %s779_s6 = sshll.u32 %s3585_s17, 4  ;;  %s4350_s22 = sld [smem:[#allocation55_spill]]  ;;  %s780_s6 = int_to_ptr.vmem [resolvable:$true] %s779_s6 }
  0xb1   : > { %s738_s4 = sshll.u32 %s4347_s27, 4  ;;  %s739_s4 = int_to_ptr.hbm [resolvable:$true] %s738_s4 }
  0xb2   : > { %s765_s29 = sshll.u32 %s4348_s5, 4  ;;  %s766_s29 = int_to_ptr.hbm [resolvable:$true] %s765_s29 }
  0xb3   : > { %2957 = dma.hbm_to_vmem [thread:$0]  (!%p3763_p6), %s739_s4, 16, %s741_s7, [#allocation9]  }
  0xb4   : > { %s777_s1 = sshll.u32 %s4349_s28, 4  ;;  %s962_s7 = scalar_lea.vmem [#allocation22], %s3847_s15  ;;  %s778_s1 = int_to_ptr.hbm [resolvable:$true] %s777_s1 }
  0xb5   : > { %2963 = dma.hbm_to_vmem [thread:$0]  (!%p3763_p6), %s766_s29, 16, %s768_s11, [#allocation12]  }
  0xb6   : > { %s967_s13 = scalar_lea.hbm %s4350_s22, %s3850_s20  ;;  %s970_s26 = sshll.u32 %s962_s7, 4  ;;  %s971_s26 = int_to_ptr.vmem [resolvable:$true] %s970_s26 }
  0xb7   : > { %s968_s4 = sshll.u32 %s967_s13, 4  ;;  %s3469_s11 = scalar_lea.hbm %s4350_s22, 64  ;;  %s969_s4 = int_to_ptr.hbm [resolvable:$true] %s968_s4 }
  0xb8   : > { %2966 = dma.hbm_to_vmem [thread:$0]  (!%p3763_p6), %s778_s1, 16, %s780_s6, [#allocation15]  }
  0xb9   : > { %s3462_s8 = sshra.s32 %s969_s4, 4  ;;  %s3463_s8 = int_to_ptr.hbm [resolvable:$true] %s3462_s8 }
  0xba   : > { %s3464_s5 = scalar_lea.hbm %s3463_s8, 32  ;;  %p3470_p9 = scmp.lt.s32.totalorder %s3463_s8, %s4350_s22 }
  0xbb   : > { %p3465_p2 = scmp.ne.s32.totalorder %s3463_s8, %s3464_s5  ;;  %p3471_p6 = scmp.lt.s32.totalorder %s3469_s11, %s3464_s5 }
  0xbd   : > { %p3467_p7 = pnand %p3465_p2, %p3816_p5  ;;  %p3472_p10 = por %p3471_p6, %p3470_p9 }
  0xbf   : > { %p3468_p8 = pneg %p3467_p7 }
  0xc1   : > { %p3473_p11 = pnand %p3472_p10, %p3468_p8 }
  0xc3   : > { %3476 = shalt.err (!%p3473_p11)
}
  0xc4   : > { %2988 = dma.hbm_to_vmem [thread:$0]  (!%p3804_p0), %s969_s4, 512, %s971_s26, %s3812_s14, %s4341_s23, %s4341_s23, %s4340_s25  }
  0xc5   : > { %1000 = sbr.rel (%p3755_p4) target bundleno = 3319 (0xcf7), region = 124 }
  0xca   : > { %3537 = dma.done.wait (%p272_p1), [#allocation6], 16  }
  0xcb   : > { %3539 = vsyncadd (%p272_p1), [#allocation6], 4294967280 }
  0xcc   : > { %3541 = dma.done.wait (%p272_p1), [#allocation9], 48  }
  0xcd   : > { %3543 = vsyncadd (%p272_p1), [#allocation9], 4294967248 }
  0xce   : > { %3545 = dma.done.wait (%p272_p1), [#allocation12], 48  }
  0xcf   : > { %3547 = vsyncadd (%p272_p1), [#allocation12], 4294967248 }
  0xd0   : > { %3549 = dma.done.wait (%p272_p1), [#allocation15], 16  }
  0xd1   : > { %3551 = vsyncadd (%p272_p1), [#allocation15], 4294967280  ;;  %s1032_s14 = sand.u32 1, %s3749_s9   ;;  %s3989_s19 = sand.u32 1, %s3566_s3  }
  0xd2   : > { %s2736_s30 = sshll.u32 %s3989_s19, 4  ;;  %s1033_s10 = scalar_lea.sflag [#allocation6], %s1032_s14 }
  0xd3   : > { %s3992_s24 = scalar_lea.vmem [#allocation16], %s2736_s30 }
  0xd4   : > { %3553 = dma.done.wait (%p3788_p12), %s1033_s10, 2352  }
  0xd5   : > { %3555 = vsyncadd (%p3788_p12), %s1033_s10, 4294964944  ;;  %s2737_s15 = sshll.u32 %s3989_s19, 5  ;;  %s2740_s25 = sshll.u32 %s3989_s19, 1 }
  0xd6   : > { %p1222_p1 = scmp.lt.s32.totalorder %s3749_s9, 1  ;;  %s4352_s27 = sld [smem:[#allocation46_spill]] }
  0xd7   : > { %s4353_s26 = sld [smem:[#allocation47_spill]]  ;;  %s1045_s0 = scalar_lea.vmem [#allocation17], %s3989_s19 }
  0xd8   : > { %s4002_s23 = scalar_select %p1222_p1, %s3749_s9, 1 }
  0xd9   : > { %s4354_s16 = sld [smem:[#allocation48_spill]]  ;;  %s4050_s22 = scalar_lea.vmem [#allocation19], %s2737_s15 }
  0xda   : > { %s2742_s18 = sshll.u32 %s4002_s23, 1  ;;  %s4355_s14 = sld [smem:[#allocation50_spill]] }
  0xdb   : > { %s4356_s1 = sld [smem:[#allocation52_spill]]  ;;  %s4052_s10 = scalar_lea.vmem [#allocation20], %s2737_s15 }
  0xdc   : > { %s4012_s13 = scalar_lea.vmem %s4352_s27, %s2742_s18  ;;  %s4357_s27 = sld [smem:[#allocation53_spill]] }
  0xdd   : > { %s4017_s8 = scalar_lea.vmem %s4353_s26, %s2742_s18  ;;  %s4358_s5 = sld [smem:[#allocation57_spill]] }
  0xde   : > { %s4359_s21 = sld [smem:[#allocation58_spill]]  ;;  %s4054_s28 = scalar_lea.vmem [#allocation21], %s2740_s25 }
  0xdf   : > { %s4022_s11 = scalar_lea.vmem %s4354_s16, %s2742_s18  ;;  %s4360_s12 = sld [smem:[#allocation40_spill]] (!%p2705_p3) }
  0xe0   : > { %s4027_s30 = scalar_lea.vmem %s4355_s14, %s2742_s18  ;;  %s4048_s14 = scalar_lea.vmem [#allocation18], %s2737_s15 }
  0xe1   : > { %s4032_s17 = scalar_lea.vmem %s4356_s1, %s2742_s18  ;;  %s4056_s1 = scalar_lea.vmem [#allocation22], %s2737_s15 }
  0xe2   : > { %s4037_s4 = scalar_lea.vmem %s4357_s27, %s2742_s18  ;;  %1259 = sbr.rel (%p2705_p3) target bundleno = 383 (0x17f), region = 180 }
  0xe3   : > { %s1251_s29 = scalar_lea.vmem %s4358_s5, %s4002_s23  ;;  %s4361_s27 = sld [smem:[#allocation37_spill]] (!%p2705_p3) }
  0xe4   : > { %s1254_s20 = scalar_lea.vmem %s4359_s21, %s4002_s23  ;;  %s4363_s16 = sld [smem:[#allocation35_spill]] (!%p2705_p3) }
  0xe5   : > { %s4364_s2 = sld [smem:[#allocation34_spill]] (!%p2705_p3) }
  0xe7   : > { %v1333_v0 = vld [vmem:[%s4360_s12] sm:$0x7]  ;;  %vm1347_vm0 = vcmask 1042432   ;;  %vm1276_vm1 = vcmask 1044480   ;;  %vm1277_vm2 = vcmask 1045504   ;;  %vm1308_vm3 = vcmask 1040384  }
  0xe8   : > { %v1349_v2 = vsel %vm1347_vm0, %v1333_v0, 0  ;;  %v3586_v5 = vmov 65535   ;;  %v1299_v7 = vld [vmem:[#allocation11] sm:$0x3]  ;;  %vm1309_vm4 = vcmask 1041408   ;;  %vm1343_vm5 = vcmask 48128  }
  0xe9   : > { %s4362_s26 = smov %s4361_s27  ;;  %v2751_v1 = vld [vmem:[%s4361_s27] sm:$0xf]  ;;  %1358 = vmatpush.bf16.msra.mxu2 %v1349_v2  ;;  %v1278_v6 = vsel %vm1276_vm1, 4294967295, %v3586_v5  ;;  %v1310_v8 = vsel %vm1308_vm3, 4294967295, %v3586_v5  ;;  %v1260_v16 = vld [vmem:[#allocation5] sm:$0x1] }
  0xea   : > { %v2885_v3 = vld [vmem:[%s4362_s26] sm:$0x30]  ;;  %v1279_v9 = vsel %vm1277_vm2, %v1278_v6, 0  ;;  %v1311_v10 = vsel %vm1309_vm4, %v1310_v8, 0  ;;  %v2757_v11 = vld [vmem:[%s4363_s16] sm:$0xf] }
  0xeb   : > { %v2752_v4 = vor.u32 %v2885_v3, %v2751_v1  ;;  %v2886_v12 = vld [vmem:[%s4363_s16] sm:$0x10]  ;;  %v1313_v14 = vand.u32 %v1311_v10, %v1299_v7  ;;  %v1298_v17 = vld [vmem:[%s4364_s2] sm:$0x7]  ;;  %vm1272_vm6 = vcmask 89088   ;;  %vm1304_vm7 = vcmask 23552  }
  0xec   : > { %v2758_v15 = vor.u32 %v2886_v12, %v2757_v11  ;;  %v3052_v18 = vld [vmem:[#allocation10] ss:$0 sm:$0xff]  ;;  %v3053_v19 = vld [vmem:[#allocation13] ss:$0 sm:$0xff]  ;;  %vm1296_vm8 = vcmask 254976   ;;  %vm1329_vm9 = vcmask 256000  }
  0xed   : > { %v1281_v13 = vand.u32 %v2752_v4, %v1279_v9  ;;  %1322 = vmatpush.bf16.msra.mxu1 %v1313_v14  ;;  %v3054_v24 = vld [vmem:[#allocation14] ss:$0 sm:$0xff]  ;;  %vm1367_vm10 = vcmask 257024   ;;  %vm1369_vm11 = vcmask 253952  }
  0xee   : > { %2759 = vmatmul.msk.bf16.vlgmr.msra.gmra.mxu2 %vm1343_vm5, %v2758_v15 }
  0xef   : > { %1290 = vmatpush.bf16.msra.mxu0 %v1281_v13 }
  0xf0   : > { %2754 = vmatmul.msk.bf16.vlgmr.msra.gmra.mxu1 %vm1304_vm7, %v1298_v17 }
  0xf2   : > { %2753 = vmatmul.msk.bf16.vlgmr.msra.gmra.mxu0 %vm1272_vm6, %v1260_v16 }
 0x16d   : > { %v1324_v21 = vpop.f32.mrf.mxu1 }
 0x16e   : > { %v1325_v23 = vadd.f32 %v3053_v19, %v1324_v21 }
 0x16f   : > { %v1292_v20 = vpop.f32.mrf.mxu0 }
 0x170   : > { %v1293_v22 = vadd.f32 %v3052_v18, %v1292_v20  ;;  %v1328_v25 = vpack.c.bf16 %v1325_v23, %v1325_v23 }
 0x171   : > { %v1360_v26 = vpop.f32.mrf.mxu2 }
 0x172   : > { %1297 = vst.msk [vmem:[#allocation2] sm:$0x3] %vm1296_vm8, %v1293_v22  ;;  %v1361_v27 = vadd.f32 %v3054_v24, %v1360_v26 }
 0x173   : > { %1330 = vst.msk [vmem:[#allocation3] sm:$0x7] %vm1329_vm9, %v1328_v25 }
 0x174   : > { %v1365_v28 = vpack.c.bf16 %v1361_v27, %v1361_v27 }
 0x175   : > { %v1326_v30 = vpop.f32.mrf.mxu1 }
 0x176   : > { %1368 = vst.msk [vmem:[#allocation4] sm:$0xf] %vm1367_vm10, %v1365_v28 }
 0x177   : > { %v1294_v29 = vpop.f32.mrf.mxu0 }
 0x179   : > { %v1362_v31 = vpop.f32.mrf.mxu2 }
 0x17a   : > { %v1363_v32 = vadd.f32 %v3054_v24, %v1362_v31 }
 0x17c   : > { %v1366_v33 = vpack.c.bf16 %v1363_v32, %v1363_v32 }
 0x17e   : > { %1370 = vst.msk [vmem:[#allocation4 + $0x4] sm:$0x1] %vm1369_vm11, %v1366_v33 }
 0x17f PF: > { %v2890_v34 = vld [vmem:[%s4048_s14 + $0x8] sm:$0xff]  ;;  %v2889_v35 = vld [vmem:[%s4048_s14] sm:$0xff]  ;;  %vm1394_vm12 = vcmask 261120   ;;  %v3055_v41 = vld [vmem:[%s4012_s13] ss:$0 sm:$0xff]  ;;  %s3587_s19 = smov 96  }
 0x180   : > { %v2888_v36 = vld [vmem:[%s3992_s24 + $0x8] sm:$0xff]  ;;  %v2887_v37 = vld [vmem:[%s3992_s24] sm:$0xff]  ;;  %1442 = vmatpush.bf16.msra.mxu1 %v2890_v34  ;;  %s3588_s24 = smov 32   ;;  %vm1577_vm13 = vcmask 1040384   ;;  %vm1578_vm14 = vcmask 1041408   ;;  %v3589_v8 = vmov 65535  }
 0x181   : > { %v4082_v38 = vld [vmem:[#allocation2] sm:$0x3]  ;;  %1404 = vmatpush.bf16.msra.mxu0 %v2888_v36  ;;  %v1412_v39 = vld [vmem:[#allocation3] sm:$0x7]  ;;  %v3056_v47 = vld [vmem:[%s1045_s0] ss:$0 sm:$0xff] }
 0x182   : > { %v1377_v40 = vpack.c.bf16 %v4082_v38, %v4082_v38  ;;  %v4094_v55 = vld [vmem:[#allocation8] sm:$0x3]  ;;  %v1579_v9 = vsel %vm1577_vm13, 4294967295, %v3589_v8  ;;  %vm1517_vm15 = vcmask 17408   ;;  %vm1573_vm4 = vcmask 23552   ;;  %s4369_s5 = sld [smem:[#allocation59_spill]] }
 0x183   : > { %v1580_v10 = vsel %vm1578_vm14, %v1579_v9, 0  ;;  %vm1623_vm9 = vcmask 254976   ;;  %vm1649_vm10 = vcmask 1041409   ;;  %p3002_p3 = scmp.eq.s32.totalorder %s3749_s9, 1 }
 0x184   : > { %1443 = vmatpush.bf16.msra.mxu1 %v2889_v35 }
 0x185   : > { %1405 = vmatpush.bf16.msra.mxu0 %v2887_v37 }
 0x187   : > { %2777 = vmatmul.msk.bf16.vlgmr.msra.gmra.mxu1 %vm1394_vm12, %v1412_v39 }
 0x188   : > { %2768 = vmatmul.msk.bf16.vlgmr.msra.gmra.mxu0 %vm1394_vm12, %v1377_v40  ;;  %s2380_s15 = sshll.u32 %s4369_s5, 4  ;;  %s2381_s15 = int_to_ptr.hbm [resolvable:$true] %s2380_s15 }
 0x204   : > { %v1445_v42 = vpop.f32.mrf.mxu1 }
 0x205   : > { %v1446_v43 = vadd.f32 %v3055_v41, %v1445_v42  ;;  %v1407_v44 = vpop.f32.mrf.mxu0 }
 0x206   : > { %v4091_v49 = vadd.f32 %v3056_v47, %v1407_v44 }
 0x207   : > { %v1450_v45 = vrot.slane %v1446_v43, 1  ;;  %v1451_v46 = vrot.slane %v1446_v43, 2  ;;  %1455 = vst [vmem:[#allocation1] ss:$9 sm:$0xff] %v1446_v43  ;;  %v1452_v51 = vrot.slane %v1446_v43, 3  ;;  %v1453_v53 = vrot.slane %v1446_v43, 4 }
 0x208   : > { %v1471_v52 = vperm.slane %v4091_v49, 0  ;;  %v1454_v56 = vrot.slane %v1446_v43, 5  ;;  %v1470_v60 = vrot.slane %v4091_v49, 1 }
 0x209   : > { %1457 = vst [vmem:[#allocation1 + $0x1] ss:$9 sm:$0xff] %v1450_v45 }
 0x20a   : > { %1459 = vst [vmem:[#allocation1 + $0x2] ss:$9 sm:$0xff] %v1451_v46  ;;  %v1475_v59 = vmul.f32 %v1471_v52, %v4094_v55  ;;  %v4101_v62 = vperm.slane %v1470_v60, 0 }
 0x20c   : > { %v1447_v48 = vpop.f32.mrf.mxu1  ;;  %v1477_v61 = vpack.c.bf16 %v1475_v59, %v1475_v59  ;;  %v1476_v3 = vmul.f32 %v4101_v62, %v4094_v55 }
 0x20d   : > { %v1409_v50 = vpop.f32.mrf.mxu0 }
 0x20e   : > { %v1478_v5 = vpack.c.bf16 %v1476_v3, %v1476_v3 }
 0x211   : > { %v1460_v54 = vld [vmem:[#allocation1] sm:$0xff] }
 0x212   : > { %1461 = vst [vmem:[#allocation1] ss:$9 sm:$0xff] %v1452_v51  ;;  %v1467_v57 = vpack.c.bf16 %v1460_v54, %v1460_v54 }
 0x213   : > { %1462 = vst [vmem:[#allocation1 + $0x1] ss:$9 sm:$0xff] %v1453_v53 }
 0x214   : > { %1463 = vst [vmem:[#allocation1 + $0x2] ss:$9 sm:$0xff] %v1454_v56  ;;  %v1483_v58 = vsel %vm1394_vm12, %v1467_v57, 0  ;;  %v1569_v6 = vunpack.c.l.b16 %v1467_v57 }
 0x215   : > { %1492 = vmatpush.bf16.xpose.msra.mxu2 %v1483_v58 }
 0x216   : > { %v1570_v7 = vpack.c.b16 %v1569_v6, %v1569_v6 }
 0x21b   : > { %v1464_v63 = vld [vmem:[#allocation1] sm:$0xff] }
 0x21c   : > { %2778 = vmatmul.msk.bf16.vlgmr.msra.gmra.mxu2 %vm1394_vm12, %v1477_v61  ;;  %v1468_v0 = vpack.c.bf16 %v1464_v63, %v1464_v63 }
 0x21e   : > { %v1502_v1 = vsel %vm1394_vm12, %v1468_v0, 0  ;;  %v1598_v2 = vunpack.c.l.b16 %v1468_v0 }
 0x21f   : > { %1511 = vmatpush.bf16.xpose.msra.mxu3 %v1502_v1 }
 0x220   : > { %v1599_v4 = vpack.c.b16 %v1598_v2, %v1598_v2 }
 0x222   : > { %1600 = vrot.lane.b32.xlu2 %v1599_v4, %s3587_s19 }
 0x226   : > { %2779 = vmatmul.msk.bf16.vlgmr.msra.gmra.mxu3 %vm1394_vm12, %v1478_v5 }
 0x22a   : > { %1571 = vrot.lane.b32.xlu2 %v1570_v7, %s3587_s19 }
 0x232   : > { %1942 = vrot.lane.b32.xlu2 %v4094_v55, %s3588_s24 }
 0x27c   : > { %v1601_v11 = vpop.permute.xlu2 %1600 }
 0x27d   : > { %v1606_v12 = vand.u32 %v1601_v11, %v1580_v10 }
 0x27f   : > { %1615 = vmatpush.bf16.msrb.mxu1 %v1606_v12 }
 0x284   : > { %v1572_v13 = vpop.permute.xlu2 %1571 }
 0x285   : > { %v1582_v14 = vand.u32 %v1580_v10, %v1572_v13 }
 0x287   : > { %1591 = vmatpush.bf16.msrb.mxu0 %v1582_v14 }
 0x29f   : > { %v1494_v15 = vpop.f32.mrf.mxu2 }
 0x2a0   : > { %v1518_v20 = vsel %vm1517_vm15, %v1494_v15, -inf }
 0x2a7   : > { %v1496_v16 = vpop.f32.mrf.mxu2 }
 0x2a8   : > { %v1639_v16 = vrot.slane %v4082_v38, 1 }
 0x2a9   : > { %v1513_v17 = vpop.f32.mrf.mxu3 }
 0x2aa   : > { %v1521_v18 = vsel %vm1517_vm15, %v1513_v17, -inf }
 0x2ab   : > { %1522 = vmax.xlane.f32.xlu0 %v1521_v18 }
 0x2b1   : > { %v1515_v19 = vpop.f32.mrf.mxu3 }
 0x2b3   : > { %1519 = vmax.xlane.f32.xlu0 %v1518_v20 }
 0x31e   : > { %v1523_v21 = vpop.xlane.xlu0 %1522 }
 0x31f   : > { %v1525_v22 = vsub.f32 %v1513_v17, %v1523_v21 }
 0x321   : > { %v1528_v23 = vmul.f32 1.442695, %v1525_v22 }
 0x323   : > { %3073 = vpow2.f32 %v1528_v23 }
 0x326   : > { %v1520_v24 = vpop.xlane.xlu0 %1519 }
 0x327   : > { %v1524_v25 = vsub.f32 %v1494_v15, %v1520_v24 }
 0x329   : > { %v3074_v26 = vpop.eup %3073  ;;  %v1526_v27 = vmul.f32 1.442695, %v1524_v25  ;;  %v1943_v25 = vpop.permute.xlu2 %1942 }
 0x32a   : > { %v1533_v28 = vsel %vm1517_vm15, %v3074_v26, 0.0 }
 0x32b   : > { %3075 = vpow2.f32 %v1526_v27  ;;  %1534 = vadd.xlane.f32.xlu1 %v1533_v28 }
 0x331   : > { %v3076_v29 = vpop.eup %3075 }
 0x332   : > { %v1530_v30 = vsel %vm1517_vm15, %v3076_v29, 0.0 }
 0x333   : > { %1531 = vadd.xlane.f32.xlu1 %v1530_v30  ;;  %v3590_v30 = vmov 32.0  }
 0x39e   : > { %v1535_v31 = vpop.xlane.xlu1 %1534 }
 0x39f   : > { %3077 = vrcp.f32 %v1535_v31  ;;  %v1562_v36 = vand.u32 2147483648, %v1535_v31  ;;  %v1560_v39 = vand.u32 2147483647, %v1535_v31  ;;  %vm1556_vm1 = vweird.f32 %v1535_v31 }
 0x3a1   : > { %v1563_v42 = vor.u32 1.1754944e-38, %v1562_v36  ;;  %vm1561_vm3 = vcmp.eq.f32.partialorder %v1560_v39, 8.507059e+37  ;;  %v2816_v36 = vld [vmem:[#allocation4] sm:$0xf] }
 0x3a5   : > { %v3078_v32 = vpop.eup %3077 }
 0x3a6   : > { %v1552_v33 = vmul.f32 %v3078_v32, %v1535_v31  ;;  %v1532_v34 = vpop.xlane.xlu1 %1531  ;;  %vm1557_vm0 = vweird.f32 %v3078_v32 }
 0x3a7   : > { %3079 = vrcp.f32 %v1532_v34  ;;  %vm1558_vm2 = vmor %vm1556_vm1, %vm1557_vm0  ;;  %v1547_v48 = vand.u32 2147483648, %v1532_v34  ;;  %v1545_v51 = vand.u32 2147483647, %v1532_v34  ;;  %vm1541_vm6 = vweird.f32 %v1532_v34 }
 0x3a8   : > { %v1553_v35 = vsub.f32 1.0, %v1552_v33  ;;  %3081 = vrcp.f32 %v3590_v30  ;;  %v2893_v30 = vld [vmem:[%s4052_s10] sm:$0xff]  ;;  %vm1997_vm1 = vcmask 33792  }
 0x3a9   : > { %v1548_v56 = vor.u32 1.1754944e-38, %v1547_v48  ;;  %vm1546_vm8 = vcmp.eq.f32.partialorder %v1545_v51, 8.507059e+37 }
 0x3aa   : > { %v1554_v37 = vmul.f32 %v3078_v32, %v1553_v35  ;;  %v2898_v35 = vld [vmem:[%s4048_s14 + $0x10] sm:$0xff] }
 0x3ac   : > { %v1555_v40 = vadd.f32 %v3078_v32, %v1554_v37  ;;  %v2897_v37 = vld [vmem:[#allocation4] sm:$0x10] }
 0x3ad   : > { %v3080_v41 = vpop.eup %3079 }
 0x3ae   : > { %v1537_v43 = vmul.f32 %v3080_v41, %v1532_v34  ;;  %v1559_v44 = vsel %vm1558_vm2, %v3078_v32, %v1555_v40  ;;  %vm1542_vm5 = vweird.f32 %v3080_v41  ;;  %v3082_v31 = vpop.eup %3081  ;;  %v2899_v34 = vld [vmem:[%s4048_s14 + $0x18] sm:$0xff]  ;;  %v2817_v40 = vor.u32 %v2897_v37, %v2816_v36 }
 0x3af   : > { %v1564_v45 = vsel %vm1561_vm3, %v1563_v42, %v1559_v44  ;;  %vm1543_vm7 = vmor %vm1541_vm6, %vm1542_vm5  ;;  %v1656_v32 = vmul.f32 32.0, %v3082_v31  ;;  %1903 = vmatpush.bf16.msra.mxu1 %v2899_v34  ;;  %vm1660_vm11 = vweird.f32 %v3082_v31  ;;  %vm2057_vm2 = vcmask 1042432  }
 0x3b0   : > { %v1538_v46 = vsub.f32 1.0, %v1537_v43  ;;  %v1565_v47 = vmul.f32 %v3074_v26, %v1564_v45  ;;  %v1946_v26 = vmul.f32 %v1943_v25, %v4101_v62 }
 0x3b1   : > { %v1657_v33 = vsub.f32 1.0, %v1656_v32 }
 0x3b2   : > { %v1539_v50 = vmul.f32 %v3080_v41, %v1538_v46  ;;  %v1567_v53 = vpack.c.bf16 %v1565_v47, %v1565_v47  ;;  %v1948_v27 = vpack.c.bf16 %v1946_v26, %v1946_v26  ;;  %v2894_v26 = vld [vmem:[%s4052_s10 + $0x8] sm:$0xff] }
 0x3b3   : > { %v1658_v39 = vmul.f32 %v3082_v31, %v1657_v33  ;;  %1904 = vmatpush.bf16.msra.mxu1 %v2898_v35  ;;  %1783 = vmatpush.bf16.msrb.mxu3 %v2894_v26  ;;  %v2058_v26 = vsel %vm1578_vm14, 4294967295, %v3589_v8 }
 0x3b4   : > { %v1540_v54 = vadd.f32 %v3080_v41, %v1539_v50  ;;  %2781 = vmatmul.msk.bf16.vlgmr.msrb.gmra.mxu1 %vm1573_vm4, %v1567_v53  ;;  %v1974_v28 = vunpack.c.l.b16 %v1948_v27 }
 0x3b6   : > { %v1544_v57 = vsel %vm1543_vm7, %v3080_v41, %v1540_v54  ;;  %v1659_v41 = vadd.f32 %v3082_v31, %v1658_v39  ;;  %v1945_v54 = vmul.f32 %v1943_v25, %v1471_v52 }
 0x3b7   : > { %v1549_v58 = vsel %vm1546_vm8, %v1548_v56, %v1544_v57  ;;  %1784 = vmatpush.bf16.msrb.mxu3 %v2893_v30 }
 0x3b8   : > { %v1550_v59 = vmul.f32 %v3076_v29, %v1549_v58  ;;  %v1975_v29 = vpack.c.b16 %v1974_v28, %v1974_v28  ;;  %v4132_v62 = vsel %vm1660_vm11, %v3082_v31, %v1659_v41  ;;  %v1947_v56 = vpack.c.bf16 %v1945_v54, %v1945_v54 }
 0x3ba   : > { %v1566_v60 = vpack.c.bf16 %v1550_v59, %v1550_v59  ;;  %v1950_v57 = vunpack.c.l.b16 %v1947_v56  ;;  %v2892_v59 = vld [vmem:[%s4050_s22 + $0x8] sm:$0xff] }
 0x3bb   : > { %1745 = vmatpush.bf16.msrb.mxu2 %v2892_v59 }
 0x3bc   : > { %2780 = vmatmul.msk.bf16.vlgmr.msrb.gmra.mxu0 %vm1573_vm4, %v1566_v60  ;;  %v1951_v58 = vpack.c.b16 %v1950_v57, %v1950_v57  ;;  %v3059_v60 = vld [vmem:[%s4012_s13 + $0x1] ss:$0 sm:$0xff] }
 0x3c4   : > { %2826 = vmatmul.msk.bf16.vlgmr.msra.gmra.mxu1 %vm1394_vm12, %v2817_v40 }
 0x431   : > { %v1617_v61 = vpop.f32.mrf.mxu1 }
 0x432   : > { %v1622_v63 = vmul.f32 %v1617_v61, %v4094_v55 }
 0x434   : > { %v1631_v0 = vsel %vm1623_vm9, %v1622_v63, 0.0  ;;  %v2891_v63 = vld [vmem:[%s4050_s22] sm:$0xff] }
 0x435   : > { %v1632_v1 = vrot.slane %v1631_v0, 4  ;;  %1746 = vmatpush.bf16.msrb.mxu2 %v2891_v63 }
 0x437   : > { %v1633_v2 = vadd.f32 %v1632_v1, %v1631_v0 }
 0x439   : > { %v1634_v3 = vrot.slane %v1633_v2, 2  ;;  %v1593_v4 = vpop.f32.mrf.mxu0  ;;  %v1619_v5 = vpop.f32.mrf.mxu1 }
 0x43a   : > { %v1621_v6 = vmul.f32 %v1593_v4, %v4094_v55 }
 0x43b   : > { %v1635_v7 = vadd.f32 %v1634_v3, %v1633_v2 }
 0x43c   : > { %v1624_v9 = vsel %vm1623_vm9, %v1621_v6, 0.0 }
 0x43d   : > { %v1636_v10 = vrot.slane %v1635_v7, 1  ;;  %v1625_v11 = vrot.slane %v1624_v9, 4 }
 0x43f   : > { %v1626_v12 = vadd.f32 %v1625_v11, %v1624_v9  ;;  %v1637_v13 = vadd.f32 %v1636_v10, %v1635_v7 }
 0x441   : > { %v1627_v14 = vrot.slane %v1626_v12, 2  ;;  %v1595_v15 = vpop.f32.mrf.mxu0  ;;  %v1643_v19 = vadd.f32 %v1639_v16, %v1637_v13  ;;  %v1906_v61 = vpop.f32.mrf.mxu1 }
 0x442   : > { %v1907_v0 = vadd.f32 %v3059_v60, %v1906_v61 }
 0x443   : > { %v1628_v17 = vadd.f32 %v1627_v14, %v1626_v12  ;;  %v1648_v22 = vrot.slane %v1643_v19, 7 }
 0x444   : > { %v1913_v1 = vrot.slane %v1907_v0, 1  ;;  %v1915_v2 = vrot.slane %v1907_v0, 3  ;;  %v1916_v3 = vrot.slane %v1907_v0, 4  ;;  %1921 = vst [vmem:[#allocation1] ss:$9 sm:$0xff] %v1907_v0  ;;  %v1914_v5 = vrot.slane %v1907_v0, 2 }
 0x445   : > { %v1629_v18 = vrot.slane %v1628_v17, 1  ;;  %v1917_v6 = vrot.slane %v1907_v0, 5  ;;  %v1918_v7 = vrot.slane %v1907_v0, 6  ;;  %v1919_v9 = vrot.slane %v1907_v0, 7 }
 0x446   : > { %1927 = vst [vmem:[#allocation1 + $0x3] ss:$9 sm:$0xff] %v1915_v2 }
 0x447   : > { %v1630_v20 = vadd.f32 %v1629_v18, %v1628_v17  ;;  %1929 = vst [vmem:[#allocation1 + $0x4] ss:$9 sm:$0xff] %v1916_v3 }
 0x448   : > { %1923 = vst [vmem:[#allocation1 + $0x1] ss:$9 sm:$0xff] %v1913_v1  ;;  %v3061_v1 = vld [vmem:[%s4032_s17] ss:$0 sm:$0xff] }
 0x449   : > { %v1642_v21 = vadd.f32 %v1630_v20, %v4082_v38  ;;  %1925 = vst [vmem:[#allocation1 + $0x2] ss:$9 sm:$0xff] %v1914_v5  ;;  %v3057_v20 = vld [vmem:[%s4017_s8] ss:$0 sm:$0xff]  ;;  %v1908_v25 = vpop.f32.mrf.mxu1 }
 0x44b   : > { %v1650_v23 = vsel %vm1649_vm10, %v1648_v22, %v1642_v21  ;;  %v3058_v22 = vld [vmem:[%s4022_s11] ss:$0 sm:$0xff] }
 0x44c   : > { %v1652_v24 = vsel %vm1623_vm9, %v1650_v23, 0.0 }
 0x44d   : > { %1653 = vadd.xlane.f32.xlu0 %v1652_v24 }
 0x450   : > { %v1930_v11 = vld [vmem:[#allocation1] sm:$0xff] }
 0x451   : > { %1931 = vst [vmem:[#allocation1] ss:$9 sm:$0xff] %v1917_v6  ;;  %v4144_v13 = vpack.c.bf16 %v1930_v11, %v1930_v11 }
 0x452   : > { %1932 = vst [vmem:[#allocation1 + $0x1] ss:$9 sm:$0xff] %v1918_v7 }
 0x453   : > { %1933 = vst [vmem:[#allocation1 + $0x2] ss:$9 sm:$0xff] %v1919_v9  ;;  %v1958_v15 = vsel %vm1394_vm12, %v4144_v13, 0  ;;  %v2049_v30 = vunpack.c.l.b16 %v4144_v13 }
 0x454   : > { %1967 = vmatpush.bf16.xpose.msra.mxu2 %v1958_v15 }
 0x461   : > { %1976 = vrot.lane.b32.xlu0 %v1975_v29, %s3587_s19  ;;  %v1909_v29 = vadd.f32 %v3059_v60, %v1908_v25 }
 0x463   : > { %v1920_v33 = vrot.slane %v1909_v29, 1  ;;  %1934 = vst [vmem:[#allocation1 + $0x3] ss:$9 sm:$0xff] %v1909_v29 }
 0x465   : > { %1935 = vst [vmem:[#allocation1 + $0x4] ss:$9 sm:$0xff] %v1920_v33 }
 0x4c0   : > { %v1654_v42 = vpop.xlane.xlu0 %1653 }
 0x4c1   : > { %v1662_v43 = vmul.f32 %v4132_v62, %v1654_v42 }
 0x4c3   : > { %v1664_v44 = vrot.slane %v1662_v43, 1  ;;  %v1667_v45 = vsub.f32 %v1642_v21, %v1662_v43  ;;  %v1936_v43 = vld [vmem:[#allocation1] sm:$0xff] }
 0x4c5   : > { %v1668_v46 = vsub.f32 %v1643_v19, %v1664_v44  ;;  %v1669_v48 = vmul.f32 %v1667_v45, %v1667_v45 }
 0x4c7   : > { %v1670_v47 = vmul.f32 %v1668_v46, %v1668_v46 }
 0x4c9   : > { %v1673_v50 = vrot.slane %v1670_v47, 7 }
 0x4cb   : > { %v1674_v51 = vsel %vm1649_vm10, %v1673_v50, %v1669_v48  ;;  %v3060_v50 = vld [vmem:[%s4027_s30] ss:$0 sm:$0xff] }
 0x4cc   : > { %v1676_v53 = vsel %vm1623_vm9, %v1674_v51, 0.0 }
 0x4cd   : > { %1677 = vadd.xlane.f32.xlu1 %v1676_v53 }
 0x4d3   : > { %v1977_v60 = vpop.permute.xlu0 %1976 }
 0x4e6   : > { %1952 = vrot.lane.b32.xlu1 %v1951_v58, %s3587_s19 }
 0x540   : > { %v1678_v4 = vpop.xlane.xlu1 %1677 }
 0x541   : > { %v1679_v49 = vmul.f32 %v1678_v4, %v4132_v62 }
 0x543   : > { %v1680_v52 = vadd.f32 1e-05, %v1679_v49 }
 0x545   : > { %3083 = vrsqrt.f32 %v1680_v52  ;;  %vm1687_vm15 = vweird.f32 %v1680_v52 }
 0x54b   : > { %v3084_v10 = vpop.eup %3083 }
 0x54c   : > { %v1682_v12 = vmul.f32 %v3084_v10, %v1680_v52  ;;  %vm1688_vm13 = vweird.f32 %v3084_v10 }
 0x54d   : > { %vm1689_vm0 = vmor %vm1687_vm15, %vm1688_vm13 }
 0x54e   : > { %v1683_v14 = vmul.f32 %v3084_v10, %v1682_v12 }
 0x550   : > { %v1684_v17 = vmul.f32 0.5, %v1683_v14 }
 0x552   : > { %v1685_v18 = vsub.f32 1.5, %v1684_v17 }
 0x554   : > { %v1686_v19 = vmul.f32 %v3084_v10, %v1685_v18 }
 0x556   : > { %v1690_v21 = vsel %vm1689_vm0, %v3084_v10, %v1686_v19  ;;  %vm2053_vm0 = vcmask 39936  }
 0x557   : > { %v1692_v23 = vrot.slane %v1690_v21, 1  ;;  %v1695_v24 = vmul.f32 %v1690_v21, %v1667_v45  ;;  %v1940_v45 = vpack.c.bf16 %v1936_v43, %v1936_v43 }
 0x558   : > { %v1953_v48 = vpop.permute.xlu1 %1952 }
 0x559   : > { %v1696_v27 = vmul.f32 %v1692_v23, %v1668_v46  ;;  %v1700_v28 = vmul.f32 %v3057_v20, %v1695_v24  ;;  %v1982_v47 = vsel %vm1394_vm12, %v1940_v45, 0  ;;  %v2077_v12 = vunpack.c.l.b16 %v1940_v45 }
 0x55a   : > { %1991 = vmatpush.bf16.xpose.msra.mxu3 %v1982_v47 }
 0x55b   : > { %v1701_v31 = vmul.f32 %v3057_v20, %v1696_v27  ;;  %v1705_v32 = vadd.f32 %v3058_v22, %v1700_v28  ;;  %v2078_v14 = vpack.c.b16 %v2077_v12, %v2077_v12  ;;  %v2059_v27 = vsel %vm2057_vm2, %v2058_v26, 0 }
 0x55d   : > { %v1706_v34 = vadd.f32 %v3058_v22, %v1701_v31  ;;  %v1711_v35 = vpack.c.bf16 %v1705_v32, %v1705_v32  ;;  %v2050_v31 = vpack.c.b16 %v2049_v30, %v2049_v30 }
 0x55f   : > { %v1712_v36 = vpack.c.bf16 %v1706_v34, %v1706_v34  ;;  %v1792_v37 = vrot.slane %v1706_v34, 7  ;;  %v1719_v41 = vunpack.c.l.b16 %v1711_v35  ;;  %v2895_v34 = vld [vmem:[%s4056_s1] sm:$0xff] }
 0x561   : > { %v1720_v39 = vunpack.c.l.b16 %v1712_v36  ;;  %v1793_v40 = vsel %vm1649_vm10, %v1792_v37, %v1705_v32  ;;  %v2896_v32 = vld [vmem:[%s4056_s1 + $0x8] sm:$0xff] }
 0x562   : > { %1854 = vmatpush.bf16.msra.mxu0 %v2896_v32 }
 0x563   : > { %v1721_v42 = vrot.slane %v1720_v39, 7 }
 0x565   : > { %v1722_v44 = vsel %vm1649_vm10, %v1721_v42, %v1719_v41 }
 0x566   : > { %v1723_v46 = vpack.c.b16 %v1722_v44, %v1722_v44  ;;  %1855 = vmatpush.bf16.msra.mxu0 %v2895_v34 }
 0x568   : > { %2790 = vmatmul.msk.bf16.vlgmr.msrb.gmra.mxu2 %vm1394_vm12, %v1723_v46  ;;  %v3062_v46 = vld [vmem:[%s4037_s4] ss:$0 sm:$0xff] }
 0x578   : > { %2827 = vmatmul.msk.bf16.vlgmr.msra.gmra.mxu2 %vm1394_vm12, %v1953_v48 }
 0x5eb   : > { %v1748_v51 = vpop.f32.mrf.mxu2 }
 0x5ec   : > { %v1749_v53 = vadd.f32 %v3060_v50, %v1748_v51  ;;  %v3063_v51 = vld [vmem:[%s4054_s28] ss:$0 sm:$0xff] }
 0x5ee   : > { %v1752_v54 = vmax.f32 %v1749_v53, 0.0 }
 0x5f0   : > { %v1757_v56 = vpack.c.bf16 %v1752_v54, %v1752_v54 }
 0x5f2   : > { %2799 = vmatmul.msk.bf16.vlgmr.msrb.gmra.mxu3 %vm1394_vm12, %v1757_v56 }
 0x5f3   : > { %v1750_v57 = vpop.f32.mrf.mxu2 }
 0x5fb   : > { %v1969_v58 = vpop.f32.mrf.mxu2 }
 0x5fc   : > { %v1998_v59 = vsel %vm1997_vm1, %v1969_v58, -inf }
 0x5fd   : > { %1999 = vmax.xlane.f32.xlu1 %v1998_v59 }
 0x602   : > { %2828 = vmatmul.msk.bf16.vlgmr.msra.gmra.mxu3 %vm1394_vm12, %v1977_v60 }
 0x603   : > { %v1971_v61 = vpop.f32.mrf.mxu2 }
 0x670   : > { %v2000_v63 = vpop.xlane.xlu1 %1999 }
 0x671   : > { %v2004_v0 = vsub.f32 %v1969_v58, %v2000_v63 }
 0x673   : > { %v2006_v2 = vmul.f32 1.442695, %v2004_v0 }
 0x675   : > { %v1786_v3 = vpop.f32.mrf.mxu3  ;;  %3085 = vpow2.f32 %v2006_v2 }
 0x676   : > { %v1787_v4 = vadd.f32 %v3061_v1, %v1786_v3 }
 0x678   : > { %v1795_v5 = vadd.f32 %v1793_v40, %v1787_v4 }
 0x67a   : > { %v1798_v49 = vsel %vm1623_vm9, %v1795_v5, 0.0 }
 0x67b   : > { %1799 = vadd.xlane.f32.xlu2 %v1798_v49  ;;  %v4163_v6 = vpop.eup %3085 }
 0x67c   : > { %v2010_v7 = vsel %vm1997_vm1, %v4163_v6, 0.0 }
 0x67d   : > { %v1788_v52 = vpop.f32.mrf.mxu3 }
 0x683   : > { %2011 = vadd.xlane.f32.xlu2 %v2010_v7 }
 0x685   : > { %v1993_v9 = vpop.f32.mrf.mxu3 }
 0x686   : > { %v2001_v10 = vsel %vm1997_vm1, %v1993_v9, -inf }
 0x687   : > { %2002 = vmax.xlane.f32.xlu0 %v2001_v10 }
 0x68d   : > { %v1995_v11 = vpop.f32.mrf.mxu3 }
 0x69b   : > { %2079 = vrot.lane.b32.xlu0 %v2078_v14, %s3587_s19 }
 0x6ee   : > { %v1800_v15 = vpop.xlane.xlu2 %1799 }
 0x6ef   : > { %v1801_v17 = vmul.f32 %v1800_v15, %v4132_v62 }
 0x6f1   : > { %v1802_v18 = vsub.f32 %v1795_v5, %v1801_v17 }
 0x6f3   : > { %v1803_v19 = vmul.f32 %v1802_v18, %v1802_v18 }
 0x6f5   : > { %v1804_v20 = vsel %vm1623_vm9, %v1803_v19, 0.0 }
 0x6f6   : > { %1805 = vadd.xlane.f32.xlu2 %v1804_v20  ;;  %v2012_v33 = vpop.xlane.xlu2 %2011 }
 0x6f7   : > { %v2027_v5 = vand.u32 2147483648, %v2012_v33  ;;  %vm2021_vm11 = vweird.f32 %v2012_v33  ;;  %v2025_v52 = vand.u32 2147483647, %v2012_v33 }
 0x6f9   : > { %v2028_v12 = vor.u32 1.1754944e-38, %v2027_v5 }
 0x6fa   : > { %v2003_v21 = vpop.xlane.xlu0 %2002 }
 0x6fb   : > { %v2005_v22 = vsub.f32 %v1993_v9, %v2003_v21 }
 0x6fd   : > { %v2008_v23 = vmul.f32 1.442695, %v2005_v22 }
 0x6ff   : > { %3087 = vpow2.f32 %v2008_v23 }
 0x705   : > { %v4171_v24 = vpop.eup %3087 }
 0x706   : > { %v2013_v25 = vsel %vm1997_vm1, %v4171_v24, 0.0  ;;  %vm2026_vm1 = vcmp.eq.f32.partialorder %v2025_v52, 8.507059e+37 }
 0x707   : > { %2014 = vadd.xlane.f32.xlu2 %v2013_v25 }
 0x70d   : > { %v2080_v28 = vpop.permute.xlu0 %2079 }
 0x70e   : > { %v2085_v29 = vand.u32 %v2080_v28, %v2059_v27 }
 0x710   : > { %2094 = vmatpush.bf16.msrb.mxu1 %v2085_v29 }
 0x71f   : > { %2051 = vrot.lane.b32.xlu2 %v2050_v31, %s3587_s19 }
 0x769   : > { %v1806_v35 = vpop.xlane.xlu2 %1805 }
 0x76a   : > { %v1807_v36 = vmul.f32 %v1806_v35, %v4132_v62 }
 0x76c   : > { %v1808_v37 = vadd.f32 1e-05, %v1807_v36 }
 0x76e   : > { %3089 = vrsqrt.f32 %v1808_v37  ;;  %vm1815_vm3 = vweird.f32 %v1808_v37 }
 0x76f   : > { %3091 = vrcp.f32 %v2012_v33 }
 0x774   : > { %v3090_v8 = vpop.eup %3089 }
 0x775   : > { %v1810_v39 = vmul.f32 %v3090_v8, %v1808_v37  ;;  %v3092_v13 = vpop.eup %3091  ;;  %vm1816_vm14 = vweird.f32 %v3090_v8 }
 0x776   : > { %v2017_v44 = vmul.f32 %v3092_v13, %v2012_v33  ;;  %vm1817_vm4 = vmor %vm1815_vm3, %vm1816_vm14  ;;  %vm2022_vm6 = vweird.f32 %v3092_v13 }
 0x777   : > { %v1811_v40 = vmul.f32 %v3090_v8, %v1810_v39  ;;  %vm2023_vm15 = vmor %vm2021_vm11, %vm2022_vm6 }
 0x778   : > { %v2018_v48 = vsub.f32 1.0, %v2017_v44 }
 0x779   : > { %v1812_v41 = vmul.f32 0.5, %v1811_v40 }
 0x77a   : > { %v2015_v42 = vpop.xlane.xlu2 %2014  ;;  %v2019_v59 = vmul.f32 %v3092_v13, %v2018_v48 }
 0x77b   : > { %v1813_v43 = vsub.f32 1.5, %v1812_v41  ;;  %3093 = vrcp.f32 %v2015_v42  ;;  %v2042_v63 = vand.u32 2147483648, %v2015_v42  ;;  %v2040_v1 = vand.u32 2147483647, %v2015_v42 }
 0x77c   : > { %v2020_v3 = vadd.f32 %v3092_v13, %v2019_v59  ;;  %vm2036_vm7 = vweird.f32 %v2015_v42  ;;  %v2903_v59 = vld [vmem:[%s4052_s10 + $0x18] sm:$0xff] }
 0x77d   : > { %v1814_v45 = vmul.f32 %v3090_v8, %v1813_v43  ;;  %v2043_v49 = vor.u32 1.1754944e-38, %v2042_v63  ;;  %vm2041_vm13 = vcmp.eq.f32.partialorder %v2040_v1, 8.507059e+37  ;;  %2255 = vmatpush.bf16.msrb.mxu3 %v2903_v59 }
 0x77e   : > { %v2024_v10 = vsel %vm2023_vm15, %v3092_v13, %v2020_v3 }
 0x77f   : > { %v1818_v47 = vsel %vm1817_vm4, %v3090_v8, %v1814_v45  ;;  %v2029_v15 = vsel %vm2026_vm1, %v2028_v12, %v2024_v10 }
 0x780   : > { %v1819_v50 = vmul.f32 %v1818_v47, %v1802_v18  ;;  %v2030_v17 = vmul.f32 %v4163_v6, %v2029_v15 }
 0x781   : > { %v3094_v53 = vpop.eup %3093 }
 0x782   : > { %v1823_v54 = vmul.f32 %v3062_v46, %v1819_v50  ;;  %v2032_v56 = vmul.f32 %v3094_v53, %v2015_v42  ;;  %v2052_v57 = vpop.permute.xlu2 %2051  ;;  %vm2037_vm5 = vweird.f32 %v3094_v53  ;;  %v2046_v18 = vpack.c.bf16 %v2030_v17, %v2030_v17 }
 0x783   : > { %v2061_v58 = vand.u32 %v2059_v27, %v2052_v57  ;;  %vm2038_vm8 = vmor %vm2036_vm7, %vm2037_vm5  ;;  %v2900_v57 = vld [vmem:[%s4050_s22 + $0x10] sm:$0xff] }
 0x784   : > { %v2033_v60 = vsub.f32 1.0, %v2032_v56  ;;  %v1827_v61 = vadd.f32 %v3063_v51, %v1823_v54 }
 0x785   : > { %2070 = vmatpush.bf16.msrb.mxu0 %v2061_v58 }
 0x786   : > { %v2034_v0 = vmul.f32 %v3094_v53, %v2033_v60  ;;  %v1832_v2 = vpack.c.bf16 %v1827_v61, %v1827_v61  ;;  %v2902_v60 = vld [vmem:[%s4052_s10 + $0x10] sm:$0xff] }
 0x787   : > { %2256 = vmatpush.bf16.msrb.mxu3 %v2902_v60 }
 0x788   : > { %v2035_v4 = vadd.f32 %v3094_v53, %v2034_v0  ;;  %2808 = vmatmul.msk.bf16.vlgmr.msra.gmra.mxu0 %vm1394_vm12, %v1832_v2 }
 0x78a   : > { %v2039_v7 = vsel %vm2038_vm8, %v3094_v53, %v2035_v4  ;;  %v2901_v53 = vld [vmem:[%s4050_s22 + $0x18] sm:$0xff] }
 0x78b   : > { %v2044_v9 = vsel %vm2041_vm13, %v2043_v49, %v2039_v7  ;;  %2215 = vmatpush.bf16.msrb.mxu2 %v2901_v53  ;;  %v3065_v4 = vld [vmem:[%s4017_s8 + $0x1] ss:$0 sm:$0xff]  ;;  %s4365_s8 = sld [smem:[#allocation56_spill]] }
 0x78c   : > { %v2045_v11 = vmul.f32 %v4171_v24, %v2044_v9  ;;  %v3066_v49 = vld [vmem:[%s4022_s11 + $0x1] ss:$0 sm:$0xff] }
 0x78e   : > { %v2047_v14 = vpack.c.bf16 %v2045_v11, %v2045_v11 }
 0x78f   : > { %2216 = vmatpush.bf16.msrb.mxu2 %v2900_v57 }
 0x790   : > { %2830 = vmatmul.msk.bf16.vlgmr.msrb.gmra.mxu1 %vm2053_vm0, %v2047_v14 }
 0x791   : > { %s4366_s11 = scalar_lea.vmem %s4365_s8, %s4002_s23 }
 0x792   : > { %v3064_v59 = vld [vmem:[%s4366_s11] ss:$0 sm:$0xff] }
 0x798   : > { %2829 = vmatmul.msk.bf16.vlgmr.msrb.gmra.mxu0 %vm2053_vm0, %v2046_v18 }
 0x805   : > { %v4187_v19 = vpop.f32.mrf.mxu0 }
 0x806   : > { %v1864_v60 = vadd.f32 %v3064_v59, %v4187_v19 }
 0x80d   : > { %v1859_v20 = vpop.f32.mrf.mxu0  ;;  %v2096_v21 = vpop.f32.mrf.mxu1 }
 0x80e   : > { %v2101_v22 = vmul.f32 %v2096_v21, %v4094_v55 }
 0x810   : > { %v2109_v23 = vsel %vm1623_vm9, %v2101_v22, 0.0 }
 0x811   : > { %v2110_v25 = vrot.slane %v2109_v23, 4 }
 0x813   : > { %v2111_v24 = vadd.f32 %v2110_v25, %v2109_v23 }
 0x815   : > { %v2112_v26 = vrot.slane %v2111_v24, 2  ;;  %v2072_v27 = vpop.f32.mrf.mxu0  ;;  %v2098_v28 = vpop.f32.mrf.mxu1 }
 0x816   : > { %v2100_v29 = vmul.f32 %v2072_v27, %v4094_v55 }
 0x817   : > { %v2113_v30 = vadd.f32 %v2112_v26, %v2111_v24  ;;  %v3067_v26 = vld [vmem:[%s4027_s30 + $0x1] ss:$0 sm:$0xff] }
 0x818   : > { %v2102_v6 = vsel %vm1623_vm9, %v2100_v29, 0.0 }
 0x819   : > { %v2114_v31 = vrot.slane %v2113_v30, 1  ;;  %v2103_v32 = vrot.slane %v2102_v6, 4 }
 0x81b   : > { %v2104_v33 = vadd.f32 %v2103_v32, %v2102_v6  ;;  %v2115_v34 = vadd.f32 %v2114_v31, %v2113_v30  ;;  %v3068_v31 = vld [vmem:[%s4032_s17 + $0x1] ss:$0 sm:$0xff] }
 0x81d   : > { %v2105_v35 = vrot.slane %v2104_v33, 2  ;;  %v2074_v36 = vpop.f32.mrf.mxu0  ;;  %v2117_v39 = vadd.f32 %v2115_v34, %v1639_v16 }
 0x81f   : > { %v2106_v37 = vadd.f32 %v2105_v35, %v2104_v33  ;;  %v2124_v41 = vrot.slane %v2117_v39, 7 }
 0x821   : > { %v2107_v8 = vrot.slane %v2106_v37, 1 }
 0x823   : > { %v2108_v40 = vadd.f32 %v2107_v8, %v2106_v37 }
 0x825   : > { %v2116_v13 = vadd.f32 %v2108_v40, %v4082_v38 }
 0x827   : > { %v2125_v55 = vsel %vm1649_vm10, %v2124_v41, %v2116_v13  ;;  %v2905_v41 = vld [vmem:[%s4056_s1 + $0x18] sm:$0xff] }
 0x828   : > { %v2127_v42 = vsel %vm1623_vm9, %v2125_v55, 0.0  ;;  %2329 = vmatpush.bf16.msra.mxu0 %v2905_v41  ;;  %v2904_v55 = vld [vmem:[%s4056_s1 + $0x10] sm:$0xff] }
 0x829   : > { %2128 = vadd.xlane.f32.xlu1 %v2127_v42 }
 0x82c   : > { %2330 = vmatpush.bf16.msra.mxu0 %v2904_v55 }
 0x89c   : > { %v2129_v43 = vpop.xlane.xlu1 %2128 }
 0x89d   : > { %v2130_v44 = vmul.f32 %v2129_v43, %v4132_v62 }
 0x89f   : > { %v2132_v45 = vrot.slane %v2130_v44, 1  ;;  %v2135_v46 = vsub.f32 %v2116_v13, %v2130_v44 }
 0x8a1   : > { %v2136_v47 = vsub.f32 %v2117_v39, %v2132_v45  ;;  %v2137_v16 = vmul.f32 %v2135_v46, %v2135_v46 }
 0x8a3   : > { %v2138_v48 = vmul.f32 %v2136_v47, %v2136_v47 }
 0x8a5   : > { %v2141_v50 = vrot.slane %v2138_v48, 7 }
 0x8a7   : > { %v2142_v38 = vsel %vm1649_vm10, %v2141_v50, %v2137_v16 }
 0x8a8   : > { %v2144_v51 = vsel %vm1623_vm9, %v2142_v38, 0.0  ;;  %v3069_v38 = vld [vmem:[%s4037_s4 + $0x1] ss:$0 sm:$0xff] }
 0x8a9   : > { %2145 = vadd.xlane.f32.xlu1 %v2144_v51 }
 0x91c   : > { %v2146_v54 = vpop.xlane.xlu1 %2145 }
 0x91d   : > { %v2147_v56 = vmul.f32 %v2146_v54, %v4132_v62  ;;  %v3070_v54 = vld [vmem:[%s4054_s28 + $0x1] ss:$0 sm:$0xff]  ;;  %s3591_s28 = smov [#allocation23]  }
 0x91e   : > { %s2378_s1 = sshll.u32 %s3591_s28, 4  ;;  %s2379_s1 = int_to_ptr.vmem [resolvable:$true] %s2378_s1 }
 0x91f   : > { %v2148_v58 = vadd.f32 1e-05, %v2147_v56 }
 0x921   : > { %3095 = vrsqrt.f32 %v2148_v58  ;;  %vm2155_vm14 = vweird.f32 %v2148_v58 }
 0x927   : > { %v3096_v61 = vpop.eup %3095 }
 0x928   : > { %v2150_v63 = vmul.f32 %v3096_v61, %v2148_v58  ;;  %vm2156_vm2 = vweird.f32 %v3096_v61 }
 0x929   : > { %vm2157_vm3 = vmor %vm2155_vm14, %vm2156_vm2 }
 0x92a   : > { %v2151_v0 = vmul.f32 %v3096_v61, %v2150_v63 }
 0x92c   : > { %v2152_v1 = vmul.f32 0.5, %v2151_v0  ;;  %v3101_v0 = vld [vmem:[#allocation2] sm:$0x3] }
 0x92e   : > { %v2153_v2 = vsub.f32 1.5, %v2152_v1 }
 0x930   : > { %v2154_v3 = vmul.f32 %v3096_v61, %v2153_v2 }
 0x932   : > { %v2158_v5 = vsel %vm2157_vm3, %v3096_v61, %v2154_v3 }
 0x933   : > { %v2160_v52 = vrot.slane %v2158_v5, 1  ;;  %v2163_v7 = vmul.f32 %v2158_v5, %v2135_v46 }
 0x935   : > { %v2164_v9 = vmul.f32 %v2160_v52, %v2136_v47  ;;  %v2168_v10 = vmul.f32 %v3065_v4, %v2163_v7 }
 0x937   : > { %v2169_v11 = vmul.f32 %v3065_v4, %v2164_v9  ;;  %v2173_v12 = vadd.f32 %v3066_v49, %v2168_v10 }
 0x939   : > { %v2174_v14 = vadd.f32 %v3066_v49, %v2169_v11  ;;  %v2180_v15 = vpack.c.bf16 %v2173_v12, %v2173_v12 }
 0x93b   : > { %v2181_v17 = vpack.c.bf16 %v2174_v14, %v2174_v14  ;;  %v2264_v18 = vrot.slane %v2174_v14, 7  ;;  %v2189_v22 = vunpack.c.l.b16 %v2180_v15 }
 0x93d   : > { %v2190_v20 = vunpack.c.l.b16 %v2181_v17  ;;  %v2265_v21 = vsel %vm1649_vm10, %v2264_v18, %v2173_v12 }
 0x93f   : > { %v2191_v23 = vrot.slane %v2190_v20, 7  ;;  %v3071_v20 = vld [vmem:[%s1251_s29] ss:$0 sm:$0xff] }
 0x941   : > { %v2192_v25 = vsel %vm1649_vm10, %v2191_v23, %v2189_v22 }
 0x942   : > { %v2193_v24 = vpack.c.b16 %v2192_v25, %v2192_v25 }
 0x944   : > { %2846 = vmatmul.msk.bf16.vlgmr.msrb.gmra.mxu2 %vm1394_vm12, %v2193_v24 }
 0x9c7   : > { %v2218_v27 = vpop.f32.mrf.mxu2 }
 0x9c8   : > { %v2219_v28 = vadd.f32 %v3067_v26, %v2218_v27 }
 0x9ca   : > { %v2222_v29 = vmax.f32 %v2219_v28, 0.0 }
 0x9cc   : > { %v2228_v30 = vpack.c.bf16 %v2222_v29, %v2222_v29 }
 0x9ce   : > { %2860 = vmatmul.msk.bf16.vlgmr.msrb.gmra.mxu3 %vm1394_vm12, %v2228_v30 }
 0x9cf   : > { %v2220_v6 = vpop.f32.mrf.mxu2 }
 0xa51   : > { %v2258_v32 = vpop.f32.mrf.mxu3 }
 0xa52   : > { %v2259_v33 = vadd.f32 %v3068_v31, %v2258_v32 }
 0xa54   : > { %v2267_v34 = vadd.f32 %v2265_v21, %v2259_v33 }
 0xa56   : > { %v2272_v35 = vsel %vm1623_vm9, %v2267_v34, 0.0 }
 0xa57   : > { %2273 = vadd.xlane.f32.xlu0 %v2272_v35 }
 0xa59   : > { %v2260_v36 = vpop.f32.mrf.mxu3 }
 0xaca   : > { %v2274_v37 = vpop.xlane.xlu0 %2273 }
 0xacb   : > { %v2275_v8 = vmul.f32 %v2274_v37, %v4132_v62 }
 0xacd   : > { %v2276_v39 = vsub.f32 %v2267_v34, %v2275_v8 }
 0xacf   : > { %v2277_v40 = vmul.f32 %v2276_v39, %v2276_v39 }
 0xad1   : > { %v2278_v13 = vsel %vm1623_vm9, %v2277_v40, 0.0 }
 0xad2   : > { %2279 = vadd.xlane.f32.xlu1 %v2278_v13 }
 0xb45   : > { %v2280_v42 = vpop.xlane.xlu1 %2279 }
 0xb46   : > { %v2281_v43 = vmul.f32 %v2280_v42, %v4132_v62 }
 0xb48   : > { %v2282_v44 = vadd.f32 1e-05, %v2281_v43 }
 0xb4a   : > { %3097 = vrsqrt.f32 %v2282_v44  ;;  %vm2289_vm4 = vweird.f32 %v2282_v44 }
 0xb50   : > { %v3098_v45 = vpop.eup %3097 }
 0xb51   : > { %v2284_v46 = vmul.f32 %v3098_v45, %v2282_v44  ;;  %vm2290_vm10 = vweird.f32 %v3098_v45 }
 0xb52   : > { %vm2291_vm5 = vmor %vm2289_vm4, %vm2290_vm10 }
 0xb53   : > { %v2285_v47 = vmul.f32 %v3098_v45, %v2284_v46 }
 0xb55   : > { %v2286_v48 = vmul.f32 0.5, %v2285_v47 }
 0xb57   : > { %v2287_v16 = vsub.f32 1.5, %v2286_v48 }
 0xb59   : > { %v2288_v50 = vmul.f32 %v3098_v45, %v2287_v16 }
 0xb5b   : > { %v2292_v51 = vsel %vm2291_vm5, %v3098_v45, %v2288_v50 }
 0xb5c   : > { %v2293_v53 = vmul.f32 %v2292_v51, %v2276_v39 }
 0xb5e   : > { %v2297_v56 = vmul.f32 %v3069_v38, %v2293_v53 }
 0xb60   : > { %v2301_v57 = vadd.f32 %v3070_v54, %v2297_v56 }
 0xb62   : > { %v2307_v58 = vpack.c.bf16 %v2301_v57, %v2301_v57 }
 0xb64   : > { %2875 = vmatmul.msk.bf16.vlgmr.msra.gmra.mxu0 %vm1394_vm12, %v2307_v58 }
 0xbe1   : > { %v2332_v61 = vpop.f32.mrf.mxu0 }
 0xbe2   : > { %v2336_v63 = vadd.f32 %v2332_v61, %v1864_v60 }
 0xbe4   : > { %v2337_v1 = vadd.f32 %v3101_v0, %v2336_v63 }
 0xbe6   : > { %v2340_v2 = vsel %vm1623_vm9, %v2337_v1, 0.0 }
 0xbe7   : > { %2341 = vadd.xlane.f32.xlu2 %v2340_v2 }
 0xbe9   : > { %v2334_v3 = vpop.f32.mrf.mxu0 }
 0xc5a   : > { %v2342_v4 = vpop.xlane.xlu2 %2341 }
 0xc5b   : > { %v2343_v5 = vmul.f32 %v2342_v4, %v4132_v62 }
 0xc5d   : > { %v2344_v49 = vsub.f32 %v2337_v1, %v2343_v5 }
 0xc5f   : > { %v2345_v52 = vmul.f32 %v2344_v49, %v2344_v49 }
 0xc61   : > { %v2346_v7 = vsel %vm1623_vm9, %v2345_v52, 0.0 }
 0xc62   : > { %2347 = vadd.xlane.f32.xlu1 %v2346_v7 }
 0xcd5   : > { %v2348_v9 = vpop.xlane.xlu1 %2347 }
 0xcd6   : > { %v2349_v19 = vmul.f32 %v2348_v9, %v4132_v62  ;;  %v3072_v62 = vld [vmem:[%s1254_s20] ss:$0 sm:$0xff] }
 0xcd8   : > { %v2350_v10 = vadd.f32 1e-05, %v2349_v19 }
 0xcda   : > { %3099 = vrsqrt.f32 %v2350_v10  ;;  %vm2357_vm6 = vweird.f32 %v2350_v10 }
 0xce0   : > { %v3100_v11 = vpop.eup %3099 }
 0xce1   : > { %v2352_v12 = vmul.f32 %v3100_v11, %v2350_v10  ;;  %vm2358_vm12 = vweird.f32 %v3100_v11 }
 0xce2   : > { %vm2359_vm7 = vmor %vm2357_vm6, %vm2358_vm12 }
 0xce3   : > { %v2353_v14 = vmul.f32 %v3100_v11, %v2352_v12 }
 0xce5   : > { %v2354_v15 = vmul.f32 0.5, %v2353_v14 }
 0xce7   : > { %v2355_v17 = vsub.f32 1.5, %v2354_v15 }
 0xce9   : > { %v2356_v18 = vmul.f32 %v3100_v11, %v2355_v17 }
 0xceb   : > { %v2360_v21 = vsel %vm2359_vm7, %v3100_v11, %v2356_v18 }
 0xcec   : > { %v2361_v22 = vmul.f32 %v2360_v21, %v2344_v49 }
 0xcee   : > { %v2365_v23 = vmul.f32 %v3071_v20, %v2361_v22 }
 0xcf0   : > { %v2369_v25 = vadd.f32 %v3072_v62, %v2365_v23 }
 0xcf2   : > { %2370 = vst.msk [vmem:[#allocation2] sm:$0x3] %vm1623_vm9, %v2369_v25 }
 0xcf3   : > { %2371 = vst.msk [vmem:[#allocation23] sm:$0x3] %vm1623_vm9, %v2369_v25 }
 0xcf4   : > { %2945 = dma.vmem_to_hbm [thread:$0]  (%p3002_p3), %s2379_s1, 32, %s2381_s15, [#allocation7]  }
 0xcf5   : > { %3557 = dma.done.wait (%p3002_p3), [#allocation7], 32  }
 0xcf6   : > { %3559 = vsyncadd (%p3002_p3), [#allocation7], 4294967264 }
 0xcf7 PF: > { %s4370_s28 = sld [smem:[#allocation31_spill]]  ;;  %s4373_s27 = smov %s3566_s3 }
 0xcf8   : > { %s4371_s23 = sld [smem:[#allocation30_spill]] }
 0xcf9   : > { %s4372_s7 = sld [smem:[#allocation32_spill]] }
 0xcfd   : > { %p38_p4 = scmp.ge.s32.totalorder %s4370_s28, 4  }
 0xcfe   : > { %s4374_s3 = smov %s4371_s23 }
 0xcff   :  { %40 = sbr.rel (!%p38_p4) target bundleno = 34 (0x22), region = 298 }
 0xd04   :  { %2394 = vsyncpa [#allocation6], 1 }
 0xd05   :  { %2396 = vsyncpa [#allocation6 + $0x1], 1 }
 0xd06   :  { %2397 = vsyncpa [#allocation9], 1 }
 0xd07   :  { %2398 = vsyncpa [#allocation12], 1 }
 0xd08   :  { %2399 = vsyncpa [#allocation15], 1 }
 0xd09   :  { %2400 = vsyncpa [#allocation7], 1 }
 0xd0a   :  { %2402 = vsyncpa [#allocation7 + $0x1], 1 }

</bundles_post_ra>
